<compile_context>
chip_gen: v7x
topology: tpu7x:2x2x1
jax: 0.10.0
libtpu: 0.0.40
codegen_flags: <defaults>
</compile_context>

<pallas_src>
import functools

import jax
import jax.numpy as jnp
from jax.experimental import pallas as pl
from jax.experimental.pallas import tpu as pltpu


TILE = 256  # 256-aligned for v6e/v7x MXU, multiple of 128 for v5e.

_MOSAIC = pltpu.CompilerParams(dimension_semantics=("parallel", "arbitrary"))


def _round_up(x, m):
    return (x + m - 1) // m * m


def _pad2(x, rows, cols):
    return jnp.pad(x, ((0, rows - x.shape[0]), (0, cols - x.shape[1])))


# ------------------------------------------------------------------ kernels ----

def _xw_kernel(x_ref, w_ref, o_ref, acc_ref):
    """o = x @ w   (bf16 operands, f32 accumulate, bf16 store)."""
    @pl.when(pl.program_id(1) == 0)
    def _():
        acc_ref[...] = jnp.zeros_like(acc_ref)

    acc_ref[...] += jnp.dot(x_ref[...], w_ref[...], preferred_element_type=jnp.float32)

    @pl.when(pl.program_id(1) == pl.num_programs(1) - 1)
    def _():
        o_ref[...] = acc_ref[...].astype(o_ref.dtype)


def _agg1_kernel(a_ref, z_ref, b1_ref, w2_ref, o_ref, acc_ref):
    """o = relu(a @ z + b1) @ w2   (layer-1 aggregation fused with layer-2 transform)."""
    @pl.when(pl.program_id(1) == 0)
    def _():
        acc_ref[...] = jnp.zeros_like(acc_ref)

    acc_ref[...] += jnp.dot(a_ref[...], z_ref[...], preferred_element_type=jnp.float32)

    @pl.when(pl.program_id(1) == pl.num_programs(1) - 1)
    def _():
        h = jnp.maximum(acc_ref[...] + b1_ref[...], 0.0)          # f32 bias + relu
        # TODO(synk): F.dropout(p=0.7) is identity at inference; training mode would use
        # pltpu.prng_seed / pltpu.prng_random_bits here.
        z2 = jnp.dot(h.astype(jnp.bfloat16), w2_ref[...],
                     preferred_element_type=jnp.float32)
        o_ref[...] = z2.astype(o_ref.dtype)


def _agg2_kernel(a_ref, z_ref, b2_ref, o_ref, acc_ref):
    """o = a @ z + b2   (layer-2 aggregation + bias)."""
    @pl.when(pl.program_id(1) == 0)
    def _():
        acc_ref[...] = jnp.zeros_like(acc_ref)

    acc_ref[...] += jnp.dot(a_ref[...], z_ref[...], preferred_element_type=jnp.float32)

    @pl.when(pl.program_id(1) == pl.num_programs(1) - 1)
    def _():
        o_ref[...] = (acc_ref[...] + b2_ref[...]).astype(o_ref.dtype)


# ----------------------------------------------------------------- wrapper ----

def _normalized_adjacency(edges, num_nodes):
    """Dense D^{-1/2} (A + I) D^{-1/2}, matching PyG gcn_norm (messages src->dst,
    symmetric normalization, edge_weight = 1). Plain-JAX glue (sparse scatter)."""
    src, dst = edges[0], edges[1]
    loop = jnp.arange(num_nodes, dtype=edges.dtype)
    src = jnp.concatenate([src, loop])
    dst = jnp.concatenate([dst, loop])
    # A[i, j] = multiplicity of edge j -> i (message from src j aggregated at dst i)
    a = jnp.zeros((num_nodes, num_nodes), jnp.float32).at[dst, src].add(1.0)
    deg = a.sum(axis=1)
    dinv = jnp.where(deg > 0.0, jax.lax.rsqrt(deg), 0.0)  # guard is moot (self loops), cheap
    return dinv[:, None] * a * dinv[None, :]


def gcn_conv_model(features, edges, edges2, edge_features, params, tile=TILE):
    """Mirrors GCNConvModel.forward(features, edges, edges2, edge_features).
    edges2 / edge_features are accepted but unused (as in the PyTorch model)."""
    del edges2, edge_features
    n, c_in = features.shape
    w1, b1, w2, b2 = params["w1"], params["b1"], params["w2"], params["b2"]
    f = w1.shape[1]
    c_out = w2.shape[1]

    a_hat = _normalized_adjacency(edges, n)

    # Pad to MXU/lane-friendly shapes (tile-multiple rows, 128-multiple lane dims).
    n_p = _round_up(n, tile)
    cin_p = _round_up(c_in, tile)
    f_p = _round_up(f, 128)
    cout_p = _round_up(c_out, 128)

    a_bf = _pad2(a_hat, n_p, n_p).astype(jnp.bfloat16)
    x_bf = _pad2(features, n_p, cin_p).astype(jnp.bfloat16)
    w1_bf = _pad2(w1, cin_p, f_p).astype(jnp.bfloat16)
    w2_bf = _pad2(w2, f_p, cout_p).astype(jnp.bfloat16)
    b1_p = _pad2(b1.reshape(1, -1), 1, f_p).astype(jnp.float32)
    b2_p = _pad2(b2.reshape(1, -1), 1, cout_p).astype(jnp.float32)

    # ---- Z1 = X @ W1 : (n_p, f_p) bf16 ----------------------------------------
    z1 = pl.pallas_call(
        _xw_kernel,
        out_shape=jax.ShapeDtypeStruct((n_p, f_p), jnp.bfloat16),
        grid=(n_p // tile, cin_p // tile),
        in_specs=[pl.BlockSpec((tile, tile), lambda i, k: (i, k)),
                  pl.BlockSpec((tile, f_p), lambda i, k: (k, 0))],
        out_specs=pl.BlockSpec((tile, f_p), lambda i, k: (i, 0)),
        scratch_shapes=[pltpu.VMEM((tile, f_p), jnp.float32)],
        compiler_params=_MOSAIC,
        cost_estimate=pl.CostEstimate(
            flops=2 * n_p * cin_p * f_p, transcendentals=0,
            bytes_accessed=2 * (n_p * cin_p + cin_p * f_p + n_p * f_p)),
    )(x_bf, w1_bf)

    # ---- Z2 = relu(A_hat @ Z1 + b1) @ W2 : (n_p, cout_p) bf16 ------------------
    z2 = pl.pallas_call(
        _agg1_kernel,
        out_shape=jax.ShapeDtypeStruct((n_p, cout_p), jnp.bfloat16),
        grid=(n_p // tile, n_p // tile),
        in_specs=[pl.BlockSpec((tile, tile), lambda i, k: (i, k)),      # A_hat row tile
                  pl.BlockSpec((tile, f_p), lambda i, k: (k, 0)),       # Z1 k-tile
                  pl.BlockSpec((1, f_p), lambda i, k: (0, 0)),          # b1 (full)
                  pl.BlockSpec((f_p, cout_p), lambda i, k: (0, 0))],    # W2 (full)
        out_specs=pl.BlockSpec((tile, cout_p), lambda i, k: (i, 0)),
        scratch_shapes=[pltpu.VMEM((tile, f_p), jnp.float32)],
        compiler_params=_MOSAIC,
        cost_estimate=pl.CostEstimate(
            flops=2 * n_p * n_p * f_p + 2 * n_p * f_p * cout_p, transcendentals=0,
            bytes_accessed=2 * (n_p * n_p + n_p * f_p + f_p * cout_p + n_p * cout_p)
                           + 4 * f_p),
    )(a_bf, z1, b1_p, w2_bf)

    # ---- Out = A_hat @ Z2 + b2 : (n_p, cout_p) f32, sliced to (n, c_out) -------
    out_p = pl.pallas_call(
        _agg2_kernel,
        out_shape=jax.ShapeDtypeStruct((n_p, cout_p), jnp.float32),
        grid=(n_p // tile, n_p // tile),
        in_specs=[pl.BlockSpec((tile, tile), lambda i, k: (i, k)),
                  pl.BlockSpec((tile, cout_p), lambda i, k: (k, 0)),
                  pl.BlockSpec((1, cout_p), lambda i, k: (0, 0))],
        out_specs=pl.BlockSpec((tile, cout_p), lambda i, k: (i, 0)),
        scratch_shapes=[pltpu.VMEM((tile, cout_p), jnp.float32)],
        compiler_params=_MOSAIC,
        cost_estimate=pl.CostEstimate(
            flops=2 * n_p * n_p * cout_p, transcendentals=0,
            bytes_accessed=2 * (n_p * n_p + n_p * cout_p)
                           + 4 * (n_p * cout_p + cout_p)),
    )(a_bf, z2, b2_p)

    return out_p[:n, :c_out]


def init_params(key, in_channels, feature_channels, out_channels):
    """Deterministic glorot-style init (GCNConv: linear weight glorot, bias zeros)."""
    k1, k2 = jax.random.split(key)

    def glorot(k, fan_in, fan_out):
        limit = jnp.sqrt(6.0 / (fan_in + fan_out))
        return jax.random.uniform(k, (fan_in, fan_out), jnp.float32, -limit, limit)

    return {
        "w1": glorot(k1, in_channels, feature_channels),
        "b1": jnp.zeros((1, feature_channels), jnp.float32),
        "w2": glorot(k2, feature_channels, out_channels),
        "b2": jnp.zeros((1, out_channels), jnp.float32),
    }


if __name__ == "__main__":
    # Small-but-representative shapes (module defaults are 1024 -> 128 -> 3);
    # N=512 with TILE=256 exercises a real 2x2 grid and the accumulator path.
    NUM_NODES = 512
    IN_CHANNELS = 256
    FEATURE_CHANNELS = 128
    OUT_CHANNELS = 3
    NUM_EDGES = 2048

    key = jax.random.PRNGKey(0)
    k_feat, k_edge, k_edge2, k_params = jax.random.split(key, 4)

    features = jax.random.normal(k_feat, (NUM_NODES, IN_CHANNELS), jnp.float32)
    edges = jax.random.randint(k_edge, (2, NUM_EDGES), 0, NUM_NODES, jnp.int32)
    edges2 = jax.random.randint(k_edge2, (2, NUM_EDGES), 0, NUM_NODES, jnp.int32)  # unused
    edge_features = None                                                            # unused

    params = init_params(k_params, IN_CHANNELS, FEATURE_CHANNELS, OUT_CHANNELS)

    fwd = jax.jit(lambda feats, eds, eds2: gcn_conv_model(feats, eds, eds2, None, params))
    out = jax.block_until_ready(fwd(features, edges, edges2))

    # Pure-JAX f32 reference (kernel uses bf16 MXU operands -> loose tolerance).
    a_hat = _normalized_adjacency(edges, NUM_NODES)
    h_ref = jnp.maximum(a_hat @ (features @ params["w1"]) + params["b1"], 0.0)
    ref = a_hat @ (h_ref @ params["w2"]) + params["b2"]

    assert out.shape == (NUM_NODES, OUT_CHANNELS)
    assert jnp.allclose(out, ref, atol=5e-2, rtol=5e-2), float(jnp.max(jnp.abs(out - ref)))

    print("KERNEL_OK")
</pallas_src>

<mosaic_0001>
module attributes {stable_mosaic.version = 11 : i64} {
  func.func private @main(%arg0: i32) attributes {dimension_semantics = [#tpu.dimension_semantics<core_parallel>], iteration_bounds = array<i64: 2>, tpu.core_type = #tpu.core_type<sc_scalar_subcore>, window_params = []} {
    return
  }
}

module attributes {stable_mosaic.version = 11 : i64} {
  func.func private @main(%arg0: i32) attributes {dimension_semantics = [#tpu.dimension_semantics<core_parallel>], iteration_bounds = array<i64: 2>, tpu.core_type = #tpu.core_type<sc_scalar_subcore>, window_params = []} {
    return
  }
}

module attributes {stable_mosaic.version = 11 : i64} {
  func.func @_xw_kernel(%arg0: i32, %arg1: i32, %arg2: memref<256x256xbf16, #tpu.memory_space<vmem>>, %arg3: memref<256x128xbf16, #tpu.memory_space<vmem>>, %arg4: memref<256x128xbf16, #tpu.memory_space<vmem>>, %arg5: memref<256x128xf32, #tpu.memory_space<vmem>>) attributes {dimension_semantics = [#tpu.dimension_semantics<parallel>, #tpu.dimension_semantics<arbitrary>], iteration_bounds = array<i64: 2, 1>, scalar_prefetch = 0 : i64, scratch_operands = 1 : i64, tpu.core_type = #tpu.core_type<tc>, window_params = [{transform_indices = @transform_0, window_bounds = array<i64: 256, 256>}, {transform_indices = @transform_1, window_bounds = array<i64: 256, 128>}, {transform_indices = @transform_2, window_bounds = array<i64: 256, 128>}]} {
    %c0_i32 = arith.constant 0 : i32
    %0 = arith.cmpi eq, %arg1, %c0_i32 : i32
    %1 = arith.extui %0 : i1 to i32
    %c0_i32_0 = arith.constant 0 : i32
    %2 = arith.cmpi ne, %1, %c0_i32_0 : i32
    scf.if %2 {
      %cst_10 = arith.constant 0.000000e+00 : f32
      %12 = vector.broadcast %cst_10 : f32 to vector<256x128xf32>
      %c0_11 = arith.constant 0 : index
      %c0_12 = arith.constant 0 : index
      %13 = vector.load %arg5[%c0_11, %c0_12] : memref<256x128xf32, #tpu.memory_space<vmem>>, vector<256x128xf32>
      tpu.vector_store %arg5[%c0_11, %c0_12], %12 {strides = array<i32>} : memref<256x128xf32, #tpu.memory_space<vmem>>, vector<256x128xf32>,
    } else {
    }
    %c0 = arith.constant 0 : index
    %c0_1 = arith.constant 0 : index
    %3 = vector.load %arg5[%c0, %c0_1] : memref<256x128xf32, #tpu.memory_space<vmem>>, vector<256x128xf32>
    %c0_2 = arith.constant 0 : index
    %c0_3 = arith.constant 0 : index
    %4 = vector.load %arg2[%c0_2, %c0_3] : memref<256x256xbf16, #tpu.memory_space<vmem>>, vector<256x256xbf16>
    %c0_4 = arith.constant 0 : index
    %c0_5 = arith.constant 0 : index
    %5 = vector.load %arg3[%c0_4, %c0_5] : memref<256x128xbf16, #tpu.memory_space<vmem>>, vector<256x128xbf16>
    %cst = arith.constant dense<0.000000e+00> : vector<256x128xf32>
    %6 = tpu.matmul %4, %5, %cst {dimension_numbers = #tpu.dot_dimension_numbers<[1], [0], [0], [1], [0, 0, 1, 1], [], []>} : vector<256x256xbf16>, vector<256x128xbf16>, vector<256x128xf32> -> vector<256x128xf32>
    %7 = arith.addf %3, %6 : vector<256x128xf32>
    %c0_6 = arith.constant 0 : index
    %c0_7 = arith.constant 0 : index
    %8 = vector.load %arg5[%c0_6, %c0_7] : memref<256x128xf32, #tpu.memory_space<vmem>>, vector<256x128xf32>
    tpu.vector_store %arg5[%c0_6, %c0_7], %7 {strides = array<i32>} : memref<256x128xf32, #tpu.memory_space<vmem>>, vector<256x128xf32>,
    %c0_i32_8 = arith.constant 0 : i32
    %9 = arith.cmpi eq, %arg1, %c0_i32_8 : i32
    %10 = arith.extui %9 : i1 to i32
    %c0_i32_9 = arith.constant 0 : i32
    %11 = arith.cmpi ne, %10, %c0_i32_9 : i32
    scf.if %11 {
      %c0_10 = arith.constant 0 : index
      %c0_11 = arith.constant 0 : index
      %12 = vector.load %arg5[%c0_10, %c0_11] : memref<256x128xf32, #tpu.memory_space<vmem>>, vector<256x128xf32>
      %13 = arith.truncf %12 : vector<256x128xf32> to vector<256x128xbf16>
      %c0_12 = arith.constant 0 : index
      %c0_13 = arith.constant 0 : index
      %14 = vector.load %arg4[%c0_12, %c0_13] : memref<256x128xbf16, #tpu.memory_space<vmem>>, vector<256x128xbf16>
      tpu.vector_store %arg4[%c0_12, %c0_13], %13 {strides = array<i32>} : memref<256x128xbf16, #tpu.memory_space<vmem>>, vector<256x128xbf16>,
    } else {
    }
    return
  }
  func.func @transform_0(%arg0: i32, %arg1: i32) -> (i32, i32) {
    %c0_i32 = arith.constant 0 : i32
    return %arg0, %arg1 : i32, i32
  }
  func.func @transform_1(%arg0: i32, %arg1: i32) -> (i32, i32) {
    %c0_i32 = arith.constant 0 : i32
    %c0_i32_0 = arith.constant 0 : i32
    return %arg1, %c0_i32 : i32, i32
  }
  func.func @transform_2(%arg0: i32, %arg1: i32) -> (i32, i32) {
    %c0_i32 = arith.constant 0 : i32
    %c0_i32_0 = arith.constant 0 : i32
    return %arg0, %c0_i32 : i32, i32
  }
}

module attributes {stable_mosaic.version = 11 : i64} {
  func.func @_agg1_kernel(%arg0: i32, %arg1: i32, %arg2: memref<256x256xbf16, #tpu.memory_space<vmem>>, %arg3: memref<256x128xbf16, #tpu.memory_space<vmem>>, %arg4: memref<1x128xf32, #tpu.memory_space<vmem>>, %arg5: memref<128x128xbf16, #tpu.memory_space<vmem>>, %arg6: memref<256x128xbf16, #tpu.memory_space<vmem>>, %arg7: memref<256x128xf32, #tpu.memory_space<vmem>>) attributes {dimension_semantics = [#tpu.dimension_semantics<parallel>, #tpu.dimension_semantics<arbitrary>], iteration_bounds = array<i64: 2, 2>, scalar_prefetch = 0 : i64, scratch_operands = 1 : i64, tpu.core_type = #tpu.core_type<tc>, window_params = [{transform_indices = @transform_0, window_bounds = array<i64: 256, 256>}, {transform_indices = @transform_1, window_bounds = array<i64: 256, 128>}, {pipeline_mode = #tpu.pipeline_mode<synchronous>, transform_indices = @transform_2, window_bounds = array<i64: 1, 128>}, {pipeline_mode = #tpu.pipeline_mode<synchronous>, transform_indices = @transform_3, window_bounds = array<i64: 128, 128>}, {transform_indices = @transform_4, window_bounds = array<i64: 256, 128>}]} {
    %c0_i32 = arith.constant 0 : i32
    %0 = arith.cmpi eq, %arg1, %c0_i32 : i32
    %1 = arith.extui %0 : i1 to i32
    %c0_i32_0 = arith.constant 0 : i32
    %2 = arith.cmpi ne, %1, %c0_i32_0 : i32
    scf.if %2 {
      %cst_9 = arith.constant 0.000000e+00 : f32
      %12 = vector.broadcast %cst_9 : f32 to vector<256x128xf32>
      %c0_10 = arith.constant 0 : index
      %c0_11 = arith.constant 0 : index
      %13 = vector.load %arg7[%c0_10, %c0_11] : memref<256x128xf32, #tpu.memory_space<vmem>>, vector<256x128xf32>
      tpu.vector_store %arg7[%c0_10, %c0_11], %12 {strides = array<i32>} : memref<256x128xf32, #tpu.memory_space<vmem>>, vector<256x128xf32>,
    } else {
    }
    %c0 = arith.constant 0 : index
    %c0_1 = arith.constant 0 : index
    %3 = vector.load %arg7[%c0, %c0_1] : memref<256x128xf32, #tpu.memory_space<vmem>>, vector<256x128xf32>
    %c0_2 = arith.constant 0 : index
    %c0_3 = arith.constant 0 : index
    %4 = vector.load %arg2[%c0_2, %c0_3] : memref<256x256xbf16, #tpu.memory_space<vmem>>, vector<256x256xbf16>
    %c0_4 = arith.constant 0 : index
    %c0_5 = arith.constant 0 : index
    %5 = vector.load %arg3[%c0_4, %c0_5] : memref<256x128xbf16, #tpu.memory_space<vmem>>, vector<256x128xbf16>
    %cst = arith.constant dense<0.000000e+00> : vector<256x128xf32>
    %6 = tpu.matmul %4, %5, %cst {dimension_numbers = #tpu.dot_dimension_numbers<[1], [0], [0], [1], [0, 0, 1, 1], [], []>} : vector<256x256xbf16>, vector<256x128xbf16>, vector<256x128xf32> -> vector<256x128xf32>
    %7 = arith.addf %3, %6 : vector<256x128xf32>
    %c0_6 = arith.constant 0 : index
    %c0_7 = arith.constant 0 : index
    %8 = vector.load %arg7[%c0_6, %c0_7] : memref<256x128xf32, #tpu.memory_space<vmem>>, vector<256x128xf32>
    tpu.vector_store %arg7[%c0_6, %c0_7], %7 {strides = array<i32>} : memref<256x128xf32, #tpu.memory_space<vmem>>, vector<256x128xf32>,
    %c1_i32 = arith.constant 1 : i32
    %9 = arith.cmpi eq, %arg1, %c1_i32 : i32
    %10 = arith.extui %9 : i1 to i32
    %c0_i32_8 = arith.constant 0 : i32
    %11 = arith.cmpi ne, %10, %c0_i32_8 : i32
    scf.if %11 {
      %c0_9 = arith.constant 0 : index
      %c0_10 = arith.constant 0 : index
      %12 = vector.load %arg7[%c0_9, %c0_10] : memref<256x128xf32, #tpu.memory_space<vmem>>, vector<256x128xf32>
      %c0_11 = arith.constant 0 : index
      %c0_12 = arith.constant 0 : index
      %13 = vector.load %arg4[%c0_11, %c0_12] : memref<1x128xf32, #tpu.memory_space<vmem>>, vector<1x128xf32>
      %14 = vector.broadcast %13 : vector<1x128xf32> to vector<256x128xf32>
      %15 = arith.addf %12, %14 : vector<256x128xf32>
      %cst_13 = arith.constant 0.000000e+00 : f32
      %16 = vector.broadcast %cst_13 : f32 to vector<256x128xf32>
      %17 = arith.maximumf %15, %16 : vector<256x128xf32>
      %18 = arith.truncf %17 : vector<256x128xf32> to vector<256x128xbf16>
      %c0_14 = arith.constant 0 : index
      %c0_15 = arith.constant 0 : index
      %19 = vector.load %arg5[%c0_14, %c0_15] : memref<128x128xbf16, #tpu.memory_space<vmem>>, vector<128x128xbf16>
      %cst_16 = arith.constant dense<0.000000e+00> : vector<256x128xf32>
      %20 = tpu.matmul %18, %19, %cst_16 {dimension_numbers = #tpu.dot_dimension_numbers<[1], [0], [0], [1], [0, 0, 1, 1], [], []>} : vector<256x128xbf16>, vector<128x128xbf16>, vector<256x128xf32> -> vector<256x128xf32>
      %21 = arith.truncf %20 : vector<256x128xf32> to vector<256x128xbf16>
      %c0_17 = arith.constant 0 : index
      %c0_18 = arith.constant 0 : index
      %22 = vector.load %arg6[%c0_17, %c0_18] : memref<256x128xbf16, #tpu.memory_space<vmem>>, vector<256x128xbf16>
      tpu.vector_store %arg6[%c0_17, %c0_18], %21 {strides = array<i32>} : memref<256x128xbf16, #tpu.memory_space<vmem>>, vector<256x128xbf16>,
    } else {
    }
    return
  }
  func.func @transform_0(%arg0: i32, %arg1: i32) -> (i32, i32) {
    %c0_i32 = arith.constant 0 : i32
    return %arg0, %arg1 : i32, i32
  }
  func.func @transform_1(%arg0: i32, %arg1: i32) -> (i32, i32) {
    %c0_i32 = arith.constant 0 : i32
    %c0_i32_0 = arith.constant 0 : i32
    return %arg1, %c0_i32 : i32, i32
  }
  func.func @transform_2(%arg0: i32, %arg1: i32) -> (i32, i32) {
    %c0_i32 = arith.constant 0 : i32
    %c0_i32_0 = arith.constant 0 : i32
    %c0_i32_1 = arith.constant 0 : i32
    return %c0_i32, %c0_i32_0 : i32, i32
  }
  func.func @transform_3(%arg0: i32, %arg1: i32) -> (i32, i32) {
    %c0_i32 = arith.constant 0 : i32
    %c0_i32_0 = arith.constant 0 : i32
    %c0_i32_1 = arith.constant 0 : i32
    return %c0_i32, %c0_i32_0 : i32, i32
  }
  func.func @transform_4(%arg0: i32, %arg1: i32) -> (i32, i32) {
    %c0_i32 = arith.constant 0 : i32
    %c0_i32_0 = arith.constant 0 : i32
    return %arg0, %c0_i32 : i32, i32
  }
}

module attributes {stable_mosaic.version = 11 : i64} {
  func.func @_agg2_kernel(%arg0: i32, %arg1: i32, %arg2: memref<256x256xbf16, #tpu.memory_space<vmem>>, %arg3: memref<256x128xbf16, #tpu.memory_space<vmem>>, %arg4: memref<1x128xf32, #tpu.memory_space<vmem>>, %arg5: memref<256x128xf32, #tpu.memory_space<vmem>>, %arg6: memref<256x128xf32, #tpu.memory_space<vmem>>) attributes {dimension_semantics = [#tpu.dimension_semantics<parallel>, #tpu.dimension_semantics<arbitrary>], iteration_bounds = array<i64: 2, 2>, scalar_prefetch = 0 : i64, scratch_operands = 1 : i64, tpu.core_type = #tpu.core_type<tc>, window_params = [{transform_indices = @transform_0, window_bounds = array<i64: 256, 256>}, {transform_indices = @transform_1, window_bounds = array<i64: 256, 128>}, {pipeline_mode = #tpu.pipeline_mode<synchronous>, transform_indices = @transform_2, window_bounds = array<i64: 1, 128>}, {transform_indices = @transform_3, window_bounds = array<i64: 256, 128>}]} {
    %c0_i32 = arith.constant 0 : i32
    %0 = arith.cmpi eq, %arg1, %c0_i32 : i32
    %1 = arith.extui %0 : i1 to i32
    %c0_i32_0 = arith.constant 0 : i32
    %2 = arith.cmpi ne, %1, %c0_i32_0 : i32
    scf.if %2 {
      %cst_9 = arith.constant 0.000000e+00 : f32
      %12 = vector.broadcast %cst_9 : f32 to vector<256x128xf32>
      %c0_10 = arith.constant 0 : index
      %c0_11 = arith.constant 0 : index
      %13 = vector.load %arg6[%c0_10, %c0_11] : memref<256x128xf32, #tpu.memory_space<vmem>>, vector<256x128xf32>
      tpu.vector_store %arg6[%c0_10, %c0_11], %12 {strides = array<i32>} : memref<256x128xf32, #tpu.memory_space<vmem>>, vector<256x128xf32>,
    } else {
    }
    %c0 = arith.constant 0 : index
    %c0_1 = arith.constant 0 : index
    %3 = vector.load %arg6[%c0, %c0_1] : memref<256x128xf32, #tpu.memory_space<vmem>>, vector<256x128xf32>
    %c0_2 = arith.constant 0 : index
    %c0_3 = arith.constant 0 : index
    %4 = vector.load %arg2[%c0_2, %c0_3] : memref<256x256xbf16, #tpu.memory_space<vmem>>, vector<256x256xbf16>
    %c0_4 = arith.constant 0 : index
    %c0_5 = arith.constant 0 : index
    %5 = vector.load %arg3[%c0_4, %c0_5] : memref<256x128xbf16, #tpu.memory_space<vmem>>, vector<256x128xbf16>
    %cst = arith.constant dense<0.000000e+00> : vector<256x128xf32>
    %6 = tpu.matmul %4, %5, %cst {dimension_numbers = #tpu.dot_dimension_numbers<[1], [0], [0], [1], [0, 0, 1, 1], [], []>} : vector<256x256xbf16>, vector<256x128xbf16>, vector<256x128xf32> -> vector<256x128xf32>
    %7 = arith.addf %3, %6 : vector<256x128xf32>
    %c0_6 = arith.constant 0 : index
    %c0_7 = arith.constant 0 : index
    %8 = vector.load %arg6[%c0_6, %c0_7] : memref<256x128xf32, #tpu.memory_space<vmem>>, vector<256x128xf32>
    tpu.vector_store %arg6[%c0_6, %c0_7], %7 {strides = array<i32>} : memref<256x128xf32, #tpu.memory_space<vmem>>, vector<256x128xf32>,
    %c1_i32 = arith.constant 1 : i32
    %9 = arith.cmpi eq, %arg1, %c1_i32 : i32
    %10 = arith.extui %9 : i1 to i32
    %c0_i32_8 = arith.constant 0 : i32
    %11 = arith.cmpi ne, %10, %c0_i32_8 : i32
    scf.if %11 {
      %c0_9 = arith.constant 0 : index
      %c0_10 = arith.constant 0 : index
      %12 = vector.load %arg6[%c0_9, %c0_10] : memref<256x128xf32, #tpu.memory_space<vmem>>, vector<256x128xf32>
      %c0_11 = arith.constant 0 : index
      %c0_12 = arith.constant 0 : index
      %13 = vector.load %arg4[%c0_11, %c0_12] : memref<1x128xf32, #tpu.memory_space<vmem>>, vector<1x128xf32>
      %14 = vector.broadcast %13 : vector<1x128xf32> to vector<256x128xf32>
      %15 = arith.addf %12, %14 : vector<256x128xf32>
      %c0_13 = arith.constant 0 : index
      %c0_14 = arith.constant 0 : index
      %16 = vector.load %arg5[%c0_13, %c0_14] : memref<256x128xf32, #tpu.memory_space<vmem>>, vector<256x128xf32>
      tpu.vector_store %arg5[%c0_13, %c0_14], %15 {strides = array<i32>} : memref<256x128xf32, #tpu.memory_space<vmem>>, vector<256x128xf32>,
    } else {
    }
    return
  }
  func.func @transform_0(%arg0: i32, %arg1: i32) -> (i32, i32) {
    %c0_i32 = arith.constant 0 : i32
    return %arg0, %arg1 : i32, i32
  }
  func.func @transform_1(%arg0: i32, %arg1: i32) -> (i32, i32) {
    %c0_i32 = arith.constant 0 : i32
    %c0_i32_0 = arith.constant 0 : i32
    return %arg1, %c0_i32 : i32, i32
  }
  func.func @transform_2(%arg0: i32, %arg1: i32) -> (i32, i32) {
    %c0_i32 = arith.constant 0 : i32
    %c0_i32_0 = arith.constant 0 : i32
    %c0_i32_1 = arith.constant 0 : i32
    return %c0_i32, %c0_i32_0 : i32, i32
  }
  func.func @transform_3(%arg0: i32, %arg1: i32) -> (i32, i32) {
    %c0_i32 = arith.constant 0 : i32
    %c0_i32_0 = arith.constant 0 : i32
    return %arg0, %c0_i32 : i32, i32
  }
}

</mosaic_0001>

<bundles_post_ra>
// kernel: _lambda_.3
= control target key start
LH: loop header
LB: loop body
LE: loop exit
PB: predicated region body
PF: predicated region fallthrough
CT: control target
= control target key end

     0   :  { %s1571_s9 = smov 0   ;;  %s1573_s10 = smov 0   ;;  %s1708_s0 = inlined_call_operand.vmem [shape: bf16[512,256], index: 0, kind: input, shape index: {}]   ;;  %s1709_s1 = inlined_call_operand.vmem [shape: bf16[256,128], index: 1, kind: input, shape index: {}]   ;;  %s1710_s2 = inlined_call_operand.vmem [shape: bf16[512,128], index: 2, kind: output, shape index: {}]  }
   0x1   :  { %s1575_s11 = smov 0  }
   0x2 LB: > { %s24_s12 = sadd.s32 1, %s1550_s10  ;;  %p1100_p0 = scmp.ge.s32.totalorder %s1554_s11, 1  ;;  %s1554_s11 = sphi %s1575_s11, %s12_s11   ;;  %s1550_s10 = sphi %s1573_s10, %s1712_s10   ;;  %s1546_s9 = sphi %s1571_s9, %s1711_s9  }
   0x3   : > { %p26_p1 = scmp.ge.s32.totalorder %s24_s12, 2  ;;  %p144_p2 = scmp.lt.s32.totalorder %s1554_s11, 3 }
   0x5   : > { %s1714_s12 = smov (%p26_p1, %s24_s12), 0  ;;  %p145_p3 = pnand %p1100_p0, %p144_p2 }
   0x6   : > { %v1468_v0 = vld [vmem:[%s1709_s1 + $0x40] sm:$0xff] (!%p145_p3)   ;;  %s1101_s15 = sshll.u32 (!%p145_p3), %s1546_s9, 5  ;;  %v1470_v2 = vld [vmem:[%s1709_s1 + $0x48] sm:$0xff] (!%p145_p3)   ;;  %v1472_v4 = vld [vmem:[%s1709_s1 + $0x50] sm:$0xff] (!%p145_p3)  }
   0x7   : > { %148 = sbr.rel (%p145_p3) target bundleno = 315 (0x13b), region = 28  ;;  %v1469_v1 = vld [vmem:[%s1709_s1] sm:$0xff] (!%p145_p3)   ;;  %1316 = vmatprep.subr.bf16.mxu0 (!%p145_p3), %v1468_v0  ;;  %1428 = vmatprep.subr.bf16.mxu1 (!%p145_p3), %v1468_v0  ;;  %v1471_v3 = vld [vmem:[%s1709_s1 + $0x8] sm:$0xff] (!%p145_p3)   ;;  %p178_p4 = scmp.lt.s32.totalorder (!%p145_p3), %s1101_s15, 63  ;;  %v1473_v5 = vld [vmem:[%s1709_s1 + $0x10] sm:$0xff] (!%p145_p3)  }
   0x8   : > { %1317 = vmatpush3.bf16.msra.mxu0 (!%p145_p3), %v1469_v1  ;;  %1436 = vmatpush3.bf16.msra.mxu1 (!%p145_p3), %v1469_v1  ;;  %v1474_v6 = vld [vmem:[%s1709_s1 + $0x58] sm:$0xff] (!%p145_p3)   ;;  %v1476_v8 = vld [vmem:[%s1709_s1 + $0x60] sm:$0xff] (!%p145_p3)   ;;  %v1478_v10 = vld [vmem:[%s1709_s1 + $0x68] sm:$0xff] (!%p145_p3)  }
   0x9   : > { %1318 = vmatprep.subr.bf16.mxu0 (!%p145_p3), %v1470_v2  ;;  %1429 = vmatprep.subr.bf16.mxu1 (!%p145_p3), %v1470_v2  ;;  %v1475_v7 = vld [vmem:[%s1709_s1 + $0x18] sm:$0xff] (!%p145_p3)   ;;  %v1477_v9 = vld [vmem:[%s1709_s1 + $0x20] sm:$0xff] (!%p145_p3)   ;;  %v1479_v13 = vld [vmem:[%s1709_s1 + $0x28] sm:$0xff] (!%p145_p3)  }
   0xa   : > { %v1480_v14 = vld [vmem:[%s1709_s1 + $0x70] sm:$0xff] (!%p145_p3)   ;;  %v1482_v16 = vld [vmem:[%s1709_s1 + $0x78] sm:$0xff] (!%p145_p3)  }
   0xb   : > { %v1481_v15 = vld [vmem:[%s1709_s1 + $0x30] sm:$0xff] (!%p145_p3)   ;;  %v1483_v17 = vld [vmem:[%s1709_s1 + $0x38] sm:$0xff] (!%p145_p3)  }
   0xc   : > { %1319 = vmatpush3.bf16.msra.mxu0 (!%p145_p3), %v1471_v3  ;;  %1437 = vmatpush3.bf16.msra.mxu1 (!%p145_p3), %v1471_v3 }
   0xd   : > { %1320 = vmatprep.subr.bf16.mxu0 (!%p145_p3), %v1472_v4  ;;  %1430 = vmatprep.subr.bf16.mxu1 (!%p145_p3), %v1472_v4 }
   0xe   : > { %s1716_s15 = smov (!%p178_p4, %s1101_s15), 63 }
   0xf   : > { %s1188_s30 = sshll.u32 %s1716_s15, 3  ;;  %s1105_s26 = sshll.u32 %s1716_s15, 2 }
  0x10   : > { %1321 = vmatpush3.bf16.msra.mxu0 %v1473_v5  ;;  %1438 = vmatpush3.bf16.msra.mxu1 %v1473_v5  ;;  %s1622_s7 = scalar_lea.vmem %s1708_s0, %s1188_s30  ;;  %s1681_s29 = scalar_lea.vmem %s1710_s2, %s1105_s26 }
  0x11   : > { %1322 = vmatprep.subr.bf16.mxu0 %v1474_v6  ;;  %1431 = vmatprep.subr.bf16.mxu1 %v1474_v6  ;;  %v1486_v11 = vld [vmem:[%s1622_s7 + $0x4] ss:$8 sps:$4 sm:$0xff]   ;;  %v1484_v18 = vld [vmem:[%s1622_s7] ss:$8 sps:$4 sm:$0xff]   ;;  %v1490_v20 = vld [vmem:[%s1622_s7 + $0x14] ss:$8 sps:$4 sm:$0xff]  }
  0x12   : > { %v1489_v12 = vld [vmem:[%s1622_s7 + $0x84] ss:$8 sps:$4 sm:$0xff]   ;;  %621 = vmatprep.mubr.bf16.mxu0 %v1486_v11  ;;  %v1487_v19 = vld [vmem:[%s1622_s7 + $0x80] ss:$8 sps:$4 sm:$0xff]   ;;  %v1492_v21 = vld [vmem:[%s1622_s7 + $0x94] ss:$8 sps:$4 sm:$0xff]  }
  0x13   : > { %685 = vmatprep.mubr.bf16.mxu1 %v1489_v12  ;;  %v1494_v22 = vld [vmem:[%s1622_s7 + $0x10] ss:$8 sps:$4 sm:$0xff]   ;;  %v1496_v24 = vld [vmem:[%s1622_s7 + $0x24] ss:$8 sps:$4 sm:$0xff]   ;;  %v1500_v26 = vld [vmem:[%s1622_s7 + $0x20] ss:$8 sps:$4 sm:$0xff]  }
  0x14   : > { %1323 = vmatpush3.bf16.msra.mxu0 %v1475_v7  ;;  %1439 = vmatpush3.bf16.msra.mxu1 %v1475_v7  ;;  %v1495_v23 = vld [vmem:[%s1622_s7 + $0x90] ss:$8 sps:$4 sm:$0xff]   ;;  %v1498_v25 = vld [vmem:[%s1622_s7 + $0xa4] ss:$8 sps:$4 sm:$0xff]   ;;  %v1501_v27 = vld [vmem:[%s1622_s7 + $0xa0] ss:$8 sps:$4 sm:$0xff]  }
  0x15   : > { %1324 = vmatprep.subr.bf16.mxu0 %v1476_v8  ;;  %1432 = vmatprep.subr.bf16.mxu1 %v1476_v8  ;;  %v1502_v28 = vld [vmem:[%s1622_s7 + $0x34] ss:$8 sps:$4 sm:$0xff]   ;;  %v1506_v30 = vld [vmem:[%s1622_s7 + $0x30] ss:$8 sps:$4 sm:$0xff]   ;;  %v1508_v32 = vld [vmem:[%s1622_s7 + $0x44] ss:$8 sps:$4 sm:$0xff]  }
  0x16   : > { %v1504_v29 = vld [vmem:[%s1622_s7 + $0xb4] ss:$8 sps:$4 sm:$0xff]   ;;  %v1507_v31 = vld [vmem:[%s1622_s7 + $0xb0] ss:$8 sps:$4 sm:$0xff]   ;;  %v1510_v33 = vld [vmem:[%s1622_s7 + $0xc4] ss:$8 sps:$4 sm:$0xff]  }
  0x17   : > { %v1512_v34 = vld [vmem:[%s1622_s7 + $0x40] ss:$8 sps:$4 sm:$0xff]   ;;  %v1514_v36 = vld [vmem:[%s1622_s7 + $0x54] ss:$8 sps:$4 sm:$0xff]   ;;  %v1518_v38 = vld [vmem:[%s1622_s7 + $0x50] ss:$8 sps:$4 sm:$0xff]  }
  0x18   : > { %1325 = vmatpush3.bf16.msra.mxu0 %v1477_v9  ;;  %1440 = vmatpush3.bf16.msra.mxu1 %v1477_v9  ;;  %v1513_v35 = vld [vmem:[%s1622_s7 + $0xc0] ss:$8 sps:$4 sm:$0xff]   ;;  %v1516_v37 = vld [vmem:[%s1622_s7 + $0xd4] ss:$8 sps:$4 sm:$0xff]   ;;  %v1519_v39 = vld [vmem:[%s1622_s7 + $0xd0] ss:$8 sps:$4 sm:$0xff]  }
  0x19   : > { %1326 = vmatprep.subr.bf16.mxu0 %v1478_v10  ;;  %1433 = vmatprep.subr.bf16.mxu1 %v1478_v10  ;;  %v1520_v40 = vld [vmem:[%s1622_s7 + $0x64] ss:$8 sps:$4 sm:$0xff]   ;;  %v1524_v42 = vld [vmem:[%s1622_s7 + $0x60] ss:$8 sps:$4 sm:$0xff]   ;;  %v1526_v44 = vld [vmem:[%s1622_s7 + $0x74] ss:$8 sps:$4 sm:$0xff]  }
  0x1a   : > { %v1522_v41 = vld [vmem:[%s1622_s7 + $0xe4] ss:$8 sps:$4 sm:$0xff]   ;;  %v1525_v43 = vld [vmem:[%s1622_s7 + $0xe0] ss:$8 sps:$4 sm:$0xff]   ;;  %v1528_v45 = vld [vmem:[%s1622_s7 + $0xf4] ss:$8 sps:$4 sm:$0xff]  }
  0x1b   : > { %v1530_v46 = vld [vmem:[%s1622_s7 + $0x70] ss:$8 sps:$4 sm:$0xff]  }
  0x1c   : > { %1327 = vmatpush3.bf16.msra.mxu0 %v1479_v13  ;;  %1441 = vmatpush3.bf16.msra.mxu1 %v1479_v13  ;;  %v1531_v47 = vld [vmem:[%s1622_s7 + $0xf0] ss:$8 sps:$4 sm:$0xff]  }
  0x1d   : > { %1328 = vmatprep.subr.bf16.mxu0 %v1480_v14  ;;  %1434 = vmatprep.subr.bf16.mxu1 %v1480_v14 }
  0x20   : > { %1329 = vmatpush3.bf16.msra.mxu0 %v1481_v15  ;;  %1442 = vmatpush3.bf16.msra.mxu1 %v1481_v15 }
  0x21   : > { %1330 = vmatprep.subr.bf16.mxu0 %v1482_v16  ;;  %1435 = vmatprep.subr.bf16.mxu1 %v1482_v16 }
  0x24   : > { %1331 = vmatpush3.bf16.msra.mxu0 %v1483_v17  ;;  %1443 = vmatpush3.bf16.msra.mxu1 %v1483_v17 }
  0x27   : > { %622 = vmatmul.mubr.bf16.vlgmr.msra.gmra.mrb[0].mxu0 %v1484_v18  ;;  %686 = vmatmul.mubr.bf16.vlgmr.msra.gmra.mrb[0].mxu1 %v1487_v19 }
  0x28   : > { %629 = vmatprep.mubr.bf16.mxu0 %v1490_v20  ;;  %693 = vmatprep.mubr.bf16.mxu1 %v1492_v21 }
  0x2f   : > { %630 = vmatmul.mubr.bf16.gmra.mrb[4].mxu0 %v1494_v22  ;;  %694 = vmatmul.mubr.bf16.gmra.mrb[4].mxu1 %v1495_v23 }
  0x30   : > { %637 = vmatprep.mubr.bf16.mxu0 %v1496_v24  ;;  %701 = vmatprep.mubr.bf16.mxu1 %v1498_v25 }
  0x37   : > { %638 = vmatmul.mubr.bf16.gmra.mrb[8].mxu0 %v1500_v26  ;;  %702 = vmatmul.mubr.bf16.gmra.mrb[8].mxu1 %v1501_v27 }
  0x38   : > { %645 = vmatprep.mubr.bf16.mxu0 %v1502_v28  ;;  %709 = vmatprep.mubr.bf16.mxu1 %v1504_v29 }
  0x3f   : > { %646 = vmatmul.mubr.bf16.gmra.mrb[12].mxu0 %v1506_v30  ;;  %710 = vmatmul.mubr.bf16.gmra.mrb[12].mxu1 %v1507_v31 }
  0x40   : > { %653 = vmatprep.mubr.bf16.mxu0 %v1508_v32  ;;  %717 = vmatprep.mubr.bf16.mxu1 %v1510_v33 }
  0x47   : > { %654 = vmatmul.mubr.bf16.gmra.mrb[16].mxu0 %v1512_v34  ;;  %718 = vmatmul.mubr.bf16.gmra.mrb[16].mxu1 %v1513_v35 }
  0x48   : > { %661 = vmatprep.mubr.bf16.mxu0 %v1514_v36  ;;  %725 = vmatprep.mubr.bf16.mxu1 %v1516_v37 }
  0x4f   : > { %662 = vmatmul.mubr.bf16.gmra.mrb[20].mxu0 %v1518_v38  ;;  %726 = vmatmul.mubr.bf16.gmra.mrb[20].mxu1 %v1519_v39 }
  0x50   : > { %669 = vmatprep.mubr.bf16.mxu0 %v1520_v40  ;;  %733 = vmatprep.mubr.bf16.mxu1 %v1522_v41 }
  0x57   : > { %670 = vmatmul.mubr.bf16.gmra.mrb[24].mxu0 %v1524_v42  ;;  %734 = vmatmul.mubr.bf16.gmra.mrb[24].mxu1 %v1525_v43 }
  0x58   : > { %677 = vmatprep.mubr.bf16.mxu0 %v1526_v44  ;;  %741 = vmatprep.mubr.bf16.mxu1 %v1528_v45 }
  0x5f   : > { %678 = vmatmul.mubr.bf16.gmra.mrb[28].mxu0 %v1530_v46  ;;  %742 = vmatmul.mubr.bf16.gmra.mrb[28].mxu1 %v1531_v47 }
  0xfa   : > { %v1332_v48 = vpop.f32.mrb[0].mxu0  ;;  %v1380_v49 = vpop.f32.mrb[0].mxu1 }
  0xfb   : > { %v1333_v50 = vpop.f32.mrb[1].mxu0  ;;  %v1381_v51 = vpop.f32.mrb[1].mxu1 }
  0xfc   : > { %v1334_v52 = vadd.f32 %v1333_v50, %v1332_v48  ;;  %v1382_v53 = vadd.f32 %v1381_v51, %v1380_v49  ;;  %v1335_v54 = vpop.f32.mrb[2].mxu0  ;;  %v1383_v55 = vpop.f32.mrb[2].mxu1 }
  0xfd   : > { %v1336_v56 = vpop.f32.mrb[3].mxu0  ;;  %v1384_v57 = vpop.f32.mrb[3].mxu1 }
  0xfe   : > { %v1337_v58 = vadd.f32 %v1336_v56, %v1335_v54  ;;  %v1385_v59 = vadd.f32 %v1384_v57, %v1383_v55 }
 0x100   : > { %v1224_v60 = vpack.c.bf16 %v1337_v58, %v1334_v52  ;;  %v1264_v61 = vpack.c.bf16 %v1385_v59, %v1382_v53 }
 0x102   : > { %1225 = vst [vmem:[%s1681_s29] sm:$0xff] %v1224_v60   ;;  %1308 = vst [vmem:[%s1681_s29 + $0x40] sm:$0xff] %v1264_v61   ;;  %v1338_v62 = vpop.f32.mrb[4].mxu0  ;;  %v1386_v63 = vpop.f32.mrb[4].mxu1 }
 0x103   : > { %v1339_v0 = vpop.f32.mrb[5].mxu0  ;;  %v1387_v1 = vpop.f32.mrb[5].mxu1 }
 0x104   : > { %v1340_v2 = vadd.f32 %v1339_v0, %v1338_v62  ;;  %v1388_v3 = vadd.f32 %v1387_v1, %v1386_v63  ;;  %v1341_v4 = vpop.f32.mrb[6].mxu0  ;;  %v1389_v5 = vpop.f32.mrb[6].mxu1 }
 0x105   : > { %v1342_v6 = vpop.f32.mrb[7].mxu0  ;;  %v1390_v7 = vpop.f32.mrb[7].mxu1 }
 0x106   : > { %v1343_v8 = vadd.f32 %v1342_v6, %v1341_v4  ;;  %v1391_v9 = vadd.f32 %v1390_v7, %v1389_v5 }
 0x108   : > { %v1229_v10 = vpack.c.bf16 %v1343_v8, %v1340_v2  ;;  %v1269_v11 = vpack.c.bf16 %v1391_v9, %v1388_v3 }
 0x10a   : > { %1301 = vst [vmem:[%s1681_s29 + $0x8] sm:$0xff] %v1229_v10   ;;  %1309 = vst [vmem:[%s1681_s29 + $0x48] sm:$0xff] %v1269_v11   ;;  %v1344_v12 = vpop.f32.mrb[8].mxu0  ;;  %v1392_v13 = vpop.f32.mrb[8].mxu1 }
 0x10b   : > { %v1345_v14 = vpop.f32.mrb[9].mxu0  ;;  %v1393_v15 = vpop.f32.mrb[9].mxu1 }
 0x10c   : > { %v1346_v16 = vadd.f32 %v1345_v14, %v1344_v12  ;;  %v1394_v17 = vadd.f32 %v1393_v15, %v1392_v13  ;;  %v1347_v18 = vpop.f32.mrb[10].mxu0  ;;  %v1395_v19 = vpop.f32.mrb[10].mxu1 }
 0x10d   : > { %v1348_v20 = vpop.f32.mrb[11].mxu0  ;;  %v1396_v21 = vpop.f32.mrb[11].mxu1 }
 0x10e   : > { %v1349_v22 = vadd.f32 %v1348_v20, %v1347_v18  ;;  %v1397_v23 = vadd.f32 %v1396_v21, %v1395_v19 }
 0x110   : > { %v1234_v24 = vpack.c.bf16 %v1349_v22, %v1346_v16  ;;  %v1274_v25 = vpack.c.bf16 %v1397_v23, %v1394_v17 }
 0x112   : > { %1302 = vst [vmem:[%s1681_s29 + $0x10] sm:$0xff] %v1234_v24   ;;  %1310 = vst [vmem:[%s1681_s29 + $0x50] sm:$0xff] %v1274_v25   ;;  %v1350_v26 = vpop.f32.mrb[12].mxu0  ;;  %v1398_v27 = vpop.f32.mrb[12].mxu1 }
 0x113   : > { %v1351_v28 = vpop.f32.mrb[13].mxu0  ;;  %v1399_v29 = vpop.f32.mrb[13].mxu1 }
 0x114   : > { %v1352_v30 = vadd.f32 %v1351_v28, %v1350_v26  ;;  %v1400_v31 = vadd.f32 %v1399_v29, %v1398_v27  ;;  %v1353_v32 = vpop.f32.mrb[14].mxu0  ;;  %v1401_v33 = vpop.f32.mrb[14].mxu1 }
 0x115   : > { %v1354_v34 = vpop.f32.mrb[15].mxu0  ;;  %v1402_v35 = vpop.f32.mrb[15].mxu1 }
 0x116   : > { %v1355_v36 = vadd.f32 %v1354_v34, %v1353_v32  ;;  %v1403_v37 = vadd.f32 %v1402_v35, %v1401_v33 }
 0x118   : > { %v1239_v38 = vpack.c.bf16 %v1355_v36, %v1352_v30  ;;  %v1279_v39 = vpack.c.bf16 %v1403_v37, %v1400_v31 }
 0x11a   : > { %1303 = vst [vmem:[%s1681_s29 + $0x18] sm:$0xff] %v1239_v38   ;;  %1311 = vst [vmem:[%s1681_s29 + $0x58] sm:$0xff] %v1279_v39   ;;  %v1356_v40 = vpop.f32.mrb[16].mxu0  ;;  %v1404_v41 = vpop.f32.mrb[16].mxu1 }
 0x11b   : > { %v1357_v42 = vpop.f32.mrb[17].mxu0  ;;  %v1405_v43 = vpop.f32.mrb[17].mxu1 }
 0x11c   : > { %v1358_v44 = vadd.f32 %v1357_v42, %v1356_v40  ;;  %v1406_v45 = vadd.f32 %v1405_v43, %v1404_v41  ;;  %v1359_v46 = vpop.f32.mrb[18].mxu0  ;;  %v1407_v47 = vpop.f32.mrb[18].mxu1 }
 0x11d   : > { %v1360_v48 = vpop.f32.mrb[19].mxu0  ;;  %v1408_v49 = vpop.f32.mrb[19].mxu1 }
 0x11e   : > { %v1361_v50 = vadd.f32 %v1360_v48, %v1359_v46  ;;  %v1409_v51 = vadd.f32 %v1408_v49, %v1407_v47 }
 0x120   : > { %v1244_v52 = vpack.c.bf16 %v1361_v50, %v1358_v44  ;;  %v1284_v53 = vpack.c.bf16 %v1409_v51, %v1406_v45 }
 0x122   : > { %1304 = vst [vmem:[%s1681_s29 + $0x20] sm:$0xff] %v1244_v52   ;;  %1312 = vst [vmem:[%s1681_s29 + $0x60] sm:$0xff] %v1284_v53   ;;  %v1362_v54 = vpop.f32.mrb[20].mxu0  ;;  %v1410_v55 = vpop.f32.mrb[20].mxu1 }
 0x123   : > { %v1363_v56 = vpop.f32.mrb[21].mxu0  ;;  %v1411_v57 = vpop.f32.mrb[21].mxu1 }
 0x124   : > { %v1364_v58 = vadd.f32 %v1363_v56, %v1362_v54  ;;  %v1412_v59 = vadd.f32 %v1411_v57, %v1410_v55  ;;  %v1365_v60 = vpop.f32.mrb[22].mxu0  ;;  %v1413_v61 = vpop.f32.mrb[22].mxu1 }
 0x125   : > { %v1366_v62 = vpop.f32.mrb[23].mxu0  ;;  %v1414_v63 = vpop.f32.mrb[23].mxu1 }
 0x126   : > { %v1367_v0 = vadd.f32 %v1366_v62, %v1365_v60  ;;  %v1415_v1 = vadd.f32 %v1414_v63, %v1413_v61 }
 0x128   : > { %v1249_v2 = vpack.c.bf16 %v1367_v0, %v1364_v58  ;;  %v1289_v3 = vpack.c.bf16 %v1415_v1, %v1412_v59 }
 0x12a   : > { %1305 = vst [vmem:[%s1681_s29 + $0x28] sm:$0xff] %v1249_v2   ;;  %1313 = vst [vmem:[%s1681_s29 + $0x68] sm:$0xff] %v1289_v3   ;;  %v1368_v4 = vpop.f32.mrb[24].mxu0  ;;  %v1416_v5 = vpop.f32.mrb[24].mxu1 }
 0x12b   : > { %v1369_v6 = vpop.f32.mrb[25].mxu0  ;;  %v1417_v7 = vpop.f32.mrb[25].mxu1 }
 0x12c   : > { %v1370_v8 = vadd.f32 %v1369_v6, %v1368_v4  ;;  %v1418_v9 = vadd.f32 %v1417_v7, %v1416_v5  ;;  %v1371_v10 = vpop.f32.mrb[26].mxu0  ;;  %v1419_v11 = vpop.f32.mrb[26].mxu1 }
 0x12d   : > { %v1372_v12 = vpop.f32.mrb[27].mxu0  ;;  %v1420_v13 = vpop.f32.mrb[27].mxu1 }
 0x12e   : > { %v1373_v14 = vadd.f32 %v1372_v12, %v1371_v10  ;;  %v1421_v15 = vadd.f32 %v1420_v13, %v1419_v11 }
 0x130   : > { %v1254_v16 = vpack.c.bf16 %v1373_v14, %v1370_v8  ;;  %v1294_v17 = vpack.c.bf16 %v1421_v15, %v1418_v9 }
 0x132   : > { %1306 = vst [vmem:[%s1681_s29 + $0x30] sm:$0xff] %v1254_v16   ;;  %1314 = vst [vmem:[%s1681_s29 + $0x70] sm:$0xff] %v1294_v17   ;;  %v1374_v18 = vpop.f32.mrb[28].mxu0  ;;  %v1422_v19 = vpop.f32.mrb[28].mxu1 }
 0x133   : > { %v1375_v20 = vpop.f32.mrb[29].mxu0  ;;  %v1423_v21 = vpop.f32.mrb[29].mxu1 }
 0x134   : > { %v1376_v22 = vadd.f32 %v1375_v20, %v1374_v18  ;;  %v1424_v23 = vadd.f32 %v1423_v21, %v1422_v19  ;;  %v1377_v24 = vpop.f32.mrb[30].mxu0  ;;  %v1425_v25 = vpop.f32.mrb[30].mxu1 }
 0x135   : > { %v1378_v26 = vpop.f32.mrb[31].mxu0  ;;  %v1426_v27 = vpop.f32.mrb[31].mxu1 }
 0x136   : > { %v1379_v28 = vadd.f32 %v1378_v26, %v1377_v24  ;;  %v1427_v29 = vadd.f32 %v1426_v27, %v1425_v25 }
 0x138   : > { %v1259_v30 = vpack.c.bf16 %v1379_v28, %v1376_v22  ;;  %v1299_v31 = vpack.c.bf16 %v1427_v29, %v1424_v23 }
 0x13a   : > { %1307 = vst [vmem:[%s1681_s29 + $0x38] sm:$0xff] %v1259_v30   ;;  %1315 = vst [vmem:[%s1681_s29 + $0x78] sm:$0xff] %v1299_v31  }
 0x13b PF: > { %s12_s11 = sadd.s32 1, %s1554_s11   ;;  %s1711_s9 = smov %s1550_s10 }
 0x13c   : > { %p9_p5 = scmp.ge.s32.totalorder %s12_s11, 4   ;;  %s1712_s10 = smov %s1714_s12 }
 0x13e   :  { %11 = sbr.rel (!%p9_p5) target bundleno = 2 (0x2), region = 69 }

// kernel: _lambda_.4
= control target key start
LH: loop header
LB: loop body
LE: loop exit
PB: predicated region body
PF: predicated region fallthrough
CT: control target
= control target key end

     0   :  { %s2273_s15 = smov 0   ;;  %s2275_s16 = smov 0   ;;  %s2566_s0 = inlined_call_operand.vmem [shape: bf16[512,512], index: 0, kind: input, shape index: {}]   ;;  %s2567_s1 = inlined_call_operand.vmem [shape: bf16[512,128], index: 1, kind: input, shape index: {}]   ;;  %s2568_s2 = inlined_call_operand.vmem [shape: f32[1,128], index: 2, kind: input, shape index: {}]   ;;  %s2569_s3 = inlined_call_operand.vmem [shape: bf16[128,128], index: 3, kind: input, shape index: {}]   ;;  %s2570_s4 = inlined_call_operand.vmem [shape: bf16[512,128], index: 4, kind: output, shape index: {}]  }
   0x1   :  { %s2277_s17 = smov 0   ;;  %s2279_s18 = smov 0  }
   0x2   :  { %s2281_s19 = smov 0   ;;  %s2283_s20 = smov 0  }
   0x3   :  { %s2285_s21 = smov 0  }
   0x4 LB: > { %s23_s22 = sadd.s32 1, %s2237_s19  ;;  %s26_s23 = sadd.s32 1, %s2241_s20  ;;  %s2245_s21 = sphi %s2285_s21, %s14_s21   ;;  %s2241_s20 = sphi %s2283_s20, %s2576_s20   ;;  %s2237_s19 = sphi %s2281_s19, %s2575_s19   ;;  %s2233_s18 = sphi %s2279_s18, %s2574_s18   ;;  %s2229_s17 = sphi %s2277_s17, %s2573_s17   ;;  %s2225_s16 = sphi %s2275_s16, %s2572_s16   ;;  %s2221_s15 = sphi %s2273_s15, %s2571_s15  }
   0x5   : > { %p24_p0 = scmp.ge.s32.totalorder %s23_s22, 2  ;;  %p42_p1 = scmp.ne.s32.totalorder %s2225_s16, %s2221_s15 }
   0x6   : > { %p43_p2 = scmp.eq.s32.totalorder %s2245_s21, 0  ;;  %s35_s27 = sadd.s32 1, %s2225_s16 }
   0x7   : > { %s2578_s22 = smov (%p24_p0, %s23_s22), 0  ;;  %s2580_s23 = smov (!%p24_p0, %s26_s23), %s2241_s20 }
   0x8   : > { %p44_p3 = por %p43_p2, %p42_p1  ;;  %p28_p4 = scmp.ge.s32.totalorder %s2580_s23, 2 }
   0x9   : > { %s31_s24 = ssub.s32 %s2237_s19, %s2578_s22  ;;  %p1613_p6 = scmp.ge.s32.totalorder %s2245_s21, 4 }
   0xa   : > { %s2582_s23 = smov (%p28_p4, %s2580_s23), 0 }
   0xb   : > { %s30_s25 = ssub.s32 %s2241_s20, %s2582_s23  ;;  %168 = sbr.rel (%p1613_p6) target bundleno = 41 (0x29), region = 24 }
   0xc   : > { %s32_s26 = sor.u32 %s31_s24, %s30_s25 }
   0xd   : > { %p33_p5 = scmp.eq.s32.totalorder %s32_s26, 0 }
   0xf   : > { %s2324_s28 = scalar_select %p33_p5, %s2225_s16, %s35_s27  }
  0x12   : > { %171 = sbr.rel (!%p44_p3) target bundleno = 41 (0x29), region = 28  ;;  %s173_s29 = sand.u32 (%p44_p3), 1, %s2225_s16  }
  0x13   : > { %s1616_s30 = sshll.u32 (%p44_p3), %s2237_s19, 1  ;;  %s1614_s5 = sshll.u32 (%p44_p3), %s173_s29, 8 }
  0x14   : > { %s1718_s6 = sshll.u32 (%p44_p3), %s2241_s20, 7  ;;  %s2338_s12 = scalar_lea.vmem (%p44_p3), [#allocation3], %s1614_s5 }
  0x15   : > { %s179_s7 = sadd.s32 (%p44_p3), %s1718_s6, %s1616_s30 }
  0x16   : > { %s1618_s8 = sshll.u32 (%p44_p3), %s179_s7, 2 }
  0x17   : > { %s2333_s11 = scalar_lea.vmem (%p44_p3), %s2566_s0, %s1618_s8 }
  0x18   : > { %v271_v0 = vld [vmem:[%s2333_s11] sm:$0xff] (%p44_p3)  ;;  %v273_v1 = vld [vmem:[%s2333_s11 + $0x10] sm:$0xff] (%p44_p3) }
  0x19   : > { %v275_v2 = vld [vmem:[%s2333_s11 + $0x20] sm:$0xff]  ;;  %272 = vst [vmem:[%s2338_s12] sm:$0xff] %v271_v0  ;;  %274 = vst [vmem:[%s2338_s12 + $0x8] sm:$0xff] %v273_v1  ;;  %v277_v3 = vld [vmem:[%s2333_s11 + $0x30] sm:$0xff] }
  0x1a   : > { %276 = vst [vmem:[%s2338_s12 + $0x10] sm:$0xff] %v275_v2  ;;  %v279_v4 = vld [vmem:[%s2333_s11 + $0x40] sm:$0xff]  ;;  %v281_v5 = vld [vmem:[%s2333_s11 + $0x50] sm:$0xff]  ;;  %278 = vst [vmem:[%s2338_s12 + $0x18] sm:$0xff] %v277_v3 }
  0x1b   : > { %280 = vst [vmem:[%s2338_s12 + $0x20] sm:$0xff] %v279_v4  ;;  %282 = vst [vmem:[%s2338_s12 + $0x28] sm:$0xff] %v281_v5  ;;  %v283_v6 = vld [vmem:[%s2333_s11 + $0x60] sm:$0xff]  ;;  %v285_v7 = vld [vmem:[%s2333_s11 + $0x70] sm:$0xff] }
  0x1c   : > { %v287_v8 = vld [vmem:[%s2333_s11 + $0x80] sm:$0xff]  ;;  %284 = vst [vmem:[%s2338_s12 + $0x30] sm:$0xff] %v283_v6  ;;  %286 = vst [vmem:[%s2338_s12 + $0x38] sm:$0xff] %v285_v7  ;;  %v289_v9 = vld [vmem:[%s2333_s11 + $0x90] sm:$0xff] }
  0x1d   : > { %288 = vst [vmem:[%s2338_s12 + $0x40] sm:$0xff] %v287_v8  ;;  %v291_v10 = vld [vmem:[%s2333_s11 + $0xa0] sm:$0xff]  ;;  %v293_v11 = vld [vmem:[%s2333_s11 + $0xb0] sm:$0xff]  ;;  %290 = vst [vmem:[%s2338_s12 + $0x48] sm:$0xff] %v289_v9 }
  0x1e   : > { %292 = vst [vmem:[%s2338_s12 + $0x50] sm:$0xff] %v291_v10  ;;  %294 = vst [vmem:[%s2338_s12 + $0x58] sm:$0xff] %v293_v11  ;;  %v295_v12 = vld [vmem:[%s2333_s11 + $0xc0] sm:$0xff]  ;;  %v297_v13 = vld [vmem:[%s2333_s11 + $0xd0] sm:$0xff] }
  0x1f   : > { %v299_v14 = vld [vmem:[%s2333_s11 + $0xe0] sm:$0xff]  ;;  %296 = vst [vmem:[%s2338_s12 + $0x60] sm:$0xff] %v295_v12  ;;  %298 = vst [vmem:[%s2338_s12 + $0x68] sm:$0xff] %v297_v13  ;;  %v301_v15 = vld [vmem:[%s2333_s11 + $0xf0] sm:$0xff] }
  0x20   : > { %300 = vst [vmem:[%s2338_s12 + $0x70] sm:$0xff] %v299_v14  ;;  %v303_v16 = vld [vmem:[%s2333_s11 + $0x100] sm:$0xff]  ;;  %v305_v17 = vld [vmem:[%s2333_s11 + $0x110] sm:$0xff]  ;;  %302 = vst [vmem:[%s2338_s12 + $0x78] sm:$0xff] %v301_v15 }
  0x21   : > { %304 = vst [vmem:[%s2338_s12 + $0x80] sm:$0xff] %v303_v16  ;;  %306 = vst [vmem:[%s2338_s12 + $0x88] sm:$0xff] %v305_v17  ;;  %v307_v18 = vld [vmem:[%s2333_s11 + $0x120] sm:$0xff]  ;;  %v309_v19 = vld [vmem:[%s2333_s11 + $0x130] sm:$0xff] }
  0x22   : > { %v311_v20 = vld [vmem:[%s2333_s11 + $0x140] sm:$0xff]  ;;  %308 = vst [vmem:[%s2338_s12 + $0x90] sm:$0xff] %v307_v18  ;;  %310 = vst [vmem:[%s2338_s12 + $0x98] sm:$0xff] %v309_v19  ;;  %v313_v21 = vld [vmem:[%s2333_s11 + $0x150] sm:$0xff] }
  0x23   : > { %312 = vst [vmem:[%s2338_s12 + $0xa0] sm:$0xff] %v311_v20  ;;  %v315_v22 = vld [vmem:[%s2333_s11 + $0x160] sm:$0xff]  ;;  %v317_v23 = vld [vmem:[%s2333_s11 + $0x170] sm:$0xff]  ;;  %314 = vst [vmem:[%s2338_s12 + $0xa8] sm:$0xff] %v313_v21 }
  0x24   : > { %316 = vst [vmem:[%s2338_s12 + $0xb0] sm:$0xff] %v315_v22  ;;  %318 = vst [vmem:[%s2338_s12 + $0xb8] sm:$0xff] %v317_v23  ;;  %v319_v24 = vld [vmem:[%s2333_s11 + $0x180] sm:$0xff]  ;;  %v321_v25 = vld [vmem:[%s2333_s11 + $0x190] sm:$0xff] }
  0x25   : > { %v323_v26 = vld [vmem:[%s2333_s11 + $0x1a0] sm:$0xff]  ;;  %320 = vst [vmem:[%s2338_s12 + $0xc0] sm:$0xff] %v319_v24  ;;  %322 = vst [vmem:[%s2338_s12 + $0xc8] sm:$0xff] %v321_v25  ;;  %v325_v27 = vld [vmem:[%s2333_s11 + $0x1b0] sm:$0xff] }
  0x26   : > { %324 = vst [vmem:[%s2338_s12 + $0xd0] sm:$0xff] %v323_v26  ;;  %v327_v28 = vld [vmem:[%s2333_s11 + $0x1c0] sm:$0xff]  ;;  %v329_v29 = vld [vmem:[%s2333_s11 + $0x1d0] sm:$0xff]  ;;  %326 = vst [vmem:[%s2338_s12 + $0xd8] sm:$0xff] %v325_v27 }
  0x27   : > { %328 = vst [vmem:[%s2338_s12 + $0xe0] sm:$0xff] %v327_v28  ;;  %330 = vst [vmem:[%s2338_s12 + $0xe8] sm:$0xff] %v329_v29  ;;  %v331_v30 = vld [vmem:[%s2333_s11 + $0x1e0] sm:$0xff]  ;;  %v333_v31 = vld [vmem:[%s2333_s11 + $0x1f0] sm:$0xff] }
  0x28   : > { %332 = vst [vmem:[%s2338_s12 + $0xf0] sm:$0xff] %v331_v30  ;;  %334 = vst [vmem:[%s2338_s12 + $0xf8] sm:$0xff] %v333_v31 }
  0x29 PF: > { %p1619_p7 = scmp.ge.s32.totalorder %s2245_s21, 1  ;;  %p348_p8 = scmp.lt.s32.totalorder %s2245_s21, 5 }
  0x2b   : > { %p349_p9 = pnand %p1619_p7, %p348_p8 }
  0x2c   : > { %s355_s13 = sand.u32 (!%p349_p9), 1, %s2221_s15   ;;  %s1621_s14 = sshll.u32 (!%p349_p9), %s2229_s17, 5 }
  0x2d   : > { %352 = sbr.rel (%p349_p9) target bundleno = 628 (0x274), region = 70  ;;  %s1620_s24 = sshll.u32 (!%p349_p9), %s355_s13, 8 }
  0x2e   : > { %p388_p10 = scmp.lt.s32.totalorder (!%p349_p9), %s1621_s14, 63  ;;  %s1623_s25 = sshll.u32 (!%p349_p9), %s2233_s18, 5 }
  0x2f   : > { %p394_p11 = scmp.lt.s32.totalorder (!%p349_p9), %s1623_s25, 63  ;;  %s2416_s15 = scalar_lea.vmem (!%p349_p9), [#allocation3], %s1620_s24 }
  0x30   : > { %p1625_p12 = scmp.ne.s32.totalorder (!%p349_p9), %s2229_s17, 0 }
  0x34   : > { %s2584_s14 = smov (!%p388_p10, %s1621_s14), 63  ;;  %s2586_s25 = smov (!%p394_p11, %s1623_s25), 63 }
  0x35   : > { %s1622_s26 = sshll.u32 %s2584_s14, 2  ;;  %s1624_s5 = sshll.u32 %s2586_s25, 2  ;;  %v2247_v32 = vmov (!%p1625_p12), 0.0  }
  0x36   : > { %s2409_s30 = scalar_lea.vmem %s2567_s1, %s1622_s26  ;;  %s2414_s8 = scalar_lea.vmem %s2570_s4, %s1624_s5  ;;  %404 = vst [vmem:[#allocation2] sm:$0xff] (!%p1625_p12), %v2247_v32  ;;  %405 = vst [vmem:[#allocation2 + $0x8] sm:$0xff] (!%p1625_p12), %v2247_v32 }
  0x37   : > { %403 = sbr.rel (%p1625_p12) target bundleno = 70 (0x46), region = 78  ;;  %406 = vst [vmem:[#allocation2 + $0x10] sm:$0xff] (!%p1625_p12), %v2247_v32  ;;  %407 = vst [vmem:[#allocation2 + $0x18] sm:$0xff] (!%p1625_p12), %v2247_v32 }
  0x38   : > { %408 = vst [vmem:[#allocation2 + $0x20] sm:$0xff] (!%p1625_p12), %v2247_v32  ;;  %409 = vst [vmem:[#allocation2 + $0x28] sm:$0xff] (!%p1625_p12), %v2247_v32 }
  0x39   : > { %410 = vst [vmem:[#allocation2 + $0x30] sm:$0xff] (!%p1625_p12), %v2247_v32  ;;  %411 = vst [vmem:[#allocation2 + $0x38] sm:$0xff] (!%p1625_p12), %v2247_v32 }
  0x3a   : > { %412 = vst [vmem:[#allocation2 + $0x40] sm:$0xff] (!%p1625_p12), %v2247_v32  ;;  %413 = vst [vmem:[#allocation2 + $0x48] sm:$0xff] (!%p1625_p12), %v2247_v32 }
  0x3b   : > { %414 = vst [vmem:[#allocation2 + $0x50] sm:$0xff] (!%p1625_p12), %v2247_v32  ;;  %415 = vst [vmem:[#allocation2 + $0x58] sm:$0xff] (!%p1625_p12), %v2247_v32 }
  0x3c   : > { %416 = vst [vmem:[#allocation2 + $0x60] sm:$0xff] (!%p1625_p12), %v2247_v32  ;;  %417 = vst [vmem:[#allocation2 + $0x68] sm:$0xff] (!%p1625_p12), %v2247_v32 }
  0x3d   : > { %418 = vst [vmem:[#allocation2 + $0x70] sm:$0xff] (!%p1625_p12), %v2247_v32  ;;  %419 = vst [vmem:[#allocation2 + $0x78] sm:$0xff] (!%p1625_p12), %v2247_v32 }
  0x3e   : > { %420 = vst [vmem:[#allocation2 + $0x80] sm:$0xff] %v2247_v32  ;;  %421 = vst [vmem:[#allocation2 + $0x88] sm:$0xff] %v2247_v32 }
  0x3f   : > { %422 = vst [vmem:[#allocation2 + $0x90] sm:$0xff] %v2247_v32  ;;  %423 = vst [vmem:[#allocation2 + $0x98] sm:$0xff] %v2247_v32 }
  0x40   : > { %424 = vst [vmem:[#allocation2 + $0xa0] sm:$0xff] %v2247_v32  ;;  %425 = vst [vmem:[#allocation2 + $0xa8] sm:$0xff] %v2247_v32 }
  0x41   : > { %426 = vst [vmem:[#allocation2 + $0xb0] sm:$0xff] %v2247_v32  ;;  %427 = vst [vmem:[#allocation2 + $0xb8] sm:$0xff] %v2247_v32 }
  0x42   : > { %428 = vst [vmem:[#allocation2 + $0xc0] sm:$0xff] %v2247_v32  ;;  %429 = vst [vmem:[#allocation2 + $0xc8] sm:$0xff] %v2247_v32 }
  0x43   : > { %430 = vst [vmem:[#allocation2 + $0xd0] sm:$0xff] %v2247_v32  ;;  %431 = vst [vmem:[#allocation2 + $0xd8] sm:$0xff] %v2247_v32 }
  0x44   : > { %432 = vst [vmem:[#allocation2 + $0xe0] sm:$0xff] %v2247_v32  ;;  %433 = vst [vmem:[#allocation2 + $0xe8] sm:$0xff] %v2247_v32 }
  0x45   : > { %434 = vst [vmem:[#allocation2 + $0xf0] sm:$0xff] %v2247_v32  ;;  %435 = vst [vmem:[#allocation2 + $0xf8] sm:$0xff] %v2247_v32 }
  0x46 PF: > { %v2119_v33 = vld [vmem:[%s2409_s30 + $0x40] sm:$0xff]   ;;  %v2121_v35 = vld [vmem:[%s2409_s30 + $0x48] sm:$0xff]   ;;  %v2123_v37 = vld [vmem:[%s2409_s30 + $0x50] sm:$0xff]   ;;  %p1674_p13 = scmp.ne.s32.totalorder %s2229_s17, 1 }
  0x47   : > { %v2120_v34 = vld [vmem:[%s2409_s30] sm:$0xff]   ;;  %1846 = vmatprep.subr.bf16.mxu0 %v2119_v33  ;;  %2030 = vmatprep.subr.bf16.mxu1 %v2119_v33  ;;  %v2122_v36 = vld [vmem:[%s2409_s30 + $0x8] sm:$0xff]   ;;  %v2124_v38 = vld [vmem:[%s2409_s30 + $0x10] sm:$0xff]  }
  0x48   : > { %1847 = vmatpush3.bf16.msra.mxu0 %v2120_v34  ;;  %2038 = vmatpush3.bf16.msra.mxu1 %v2120_v34  ;;  %v2125_v39 = vld [vmem:[%s2409_s30 + $0x58] sm:$0xff]   ;;  %v2127_v41 = vld [vmem:[%s2409_s30 + $0x60] sm:$0xff]   ;;  %v2129_v43 = vld [vmem:[%s2409_s30 + $0x68] sm:$0xff]  }
  0x49   : > { %1848 = vmatprep.subr.bf16.mxu0 %v2121_v35  ;;  %2031 = vmatprep.subr.bf16.mxu1 %v2121_v35  ;;  %v2126_v40 = vld [vmem:[%s2409_s30 + $0x18] sm:$0xff]   ;;  %v2128_v42 = vld [vmem:[%s2409_s30 + $0x20] sm:$0xff]   ;;  %v2130_v46 = vld [vmem:[%s2409_s30 + $0x28] sm:$0xff]  }
  0x4a   : > { %v2137_v44 = vld [vmem:[%s2416_s15 + $0x4] ss:$8 sps:$4 sm:$0xff]   ;;  %v2131_v47 = vld [vmem:[%s2409_s30 + $0x70] sm:$0xff]   ;;  %v2133_v49 = vld [vmem:[%s2409_s30 + $0x78] sm:$0xff]  }
  0x4b   : > { %v2140_v45 = vld [vmem:[%s2416_s15 + $0x84] ss:$8 sps:$4 sm:$0xff]   ;;  %820 = vmatprep.mubr.bf16.mxu0 %v2137_v44  ;;  %v2132_v48 = vld [vmem:[%s2409_s30 + $0x30] sm:$0xff]   ;;  %v2134_v50 = vld [vmem:[%s2409_s30 + $0x38] sm:$0xff]  }
  0x4c   : > { %1849 = vmatpush3.bf16.msra.mxu0 %v2122_v36  ;;  %2039 = vmatpush3.bf16.msra.mxu1 %v2122_v36  ;;  %v2135_v51 = vld [vmem:[%s2416_s15] ss:$8 sps:$4 sm:$0xff]   ;;  %v2141_v53 = vld [vmem:[%s2416_s15 + $0x14] ss:$8 sps:$4 sm:$0xff]   ;;  %v2145_v55 = vld [vmem:[%s2416_s15 + $0x10] ss:$8 sps:$4 sm:$0xff]  }
  0x4d   : > { %1850 = vmatprep.subr.bf16.mxu0 %v2123_v37  ;;  %2032 = vmatprep.subr.bf16.mxu1 %v2123_v37  ;;  %v2138_v52 = vld [vmem:[%s2416_s15 + $0x80] ss:$8 sps:$4 sm:$0xff]   ;;  %v2143_v54 = vld [vmem:[%s2416_s15 + $0x94] ss:$8 sps:$4 sm:$0xff]   ;;  %v2146_v56 = vld [vmem:[%s2416_s15 + $0x90] ss:$8 sps:$4 sm:$0xff]  }
  0x4e   : > { %884 = vmatprep.mubr.bf16.mxu1 %v2140_v45  ;;  %v2147_v57 = vld [vmem:[%s2416_s15 + $0x24] ss:$8 sps:$4 sm:$0xff]   ;;  %v2151_v59 = vld [vmem:[%s2416_s15 + $0x20] ss:$8 sps:$4 sm:$0xff]   ;;  %v2153_v61 = vld [vmem:[%s2416_s15 + $0x34] ss:$8 sps:$4 sm:$0xff]  }
  0x4f   : > { %v2149_v58 = vld [vmem:[%s2416_s15 + $0xa4] ss:$8 sps:$4 sm:$0xff]   ;;  %v2152_v60 = vld [vmem:[%s2416_s15 + $0xa0] ss:$8 sps:$4 sm:$0xff]   ;;  %v2155_v62 = vld [vmem:[%s2416_s15 + $0xb4] ss:$8 sps:$4 sm:$0xff]  }
  0x50   : > { %1851 = vmatpush3.bf16.msra.mxu0 %v2124_v38  ;;  %2040 = vmatpush3.bf16.msra.mxu1 %v2124_v38  ;;  %v2157_v63 = vld [vmem:[%s2416_s15 + $0x30] ss:$8 sps:$4 sm:$0xff]   ;;  %v2159_v1 = vld [vmem:[%s2416_s15 + $0x44] ss:$8 sps:$4 sm:$0xff]   ;;  %v2163_v3 = vld [vmem:[%s2416_s15 + $0x40] ss:$8 sps:$4 sm:$0xff]  }
  0x51   : > { %1852 = vmatprep.subr.bf16.mxu0 %v2125_v39  ;;  %2033 = vmatprep.subr.bf16.mxu1 %v2125_v39  ;;  %v2158_v0 = vld [vmem:[%s2416_s15 + $0xb0] ss:$8 sps:$4 sm:$0xff]   ;;  %v2161_v2 = vld [vmem:[%s2416_s15 + $0xc4] ss:$8 sps:$4 sm:$0xff]   ;;  %v2164_v4 = vld [vmem:[%s2416_s15 + $0xc0] ss:$8 sps:$4 sm:$0xff]  }
  0x52   : > { %v2165_v5 = vld [vmem:[%s2416_s15 + $0x54] ss:$8 sps:$4 sm:$0xff]   ;;  %v2169_v7 = vld [vmem:[%s2416_s15 + $0x50] ss:$8 sps:$4 sm:$0xff]   ;;  %v2171_v9 = vld [vmem:[%s2416_s15 + $0x64] ss:$8 sps:$4 sm:$0xff]  }
  0x53   : > { %v2167_v6 = vld [vmem:[%s2416_s15 + $0xd4] ss:$8 sps:$4 sm:$0xff]   ;;  %v2170_v8 = vld [vmem:[%s2416_s15 + $0xd0] ss:$8 sps:$4 sm:$0xff]   ;;  %v2173_v10 = vld [vmem:[%s2416_s15 + $0xe4] ss:$8 sps:$4 sm:$0xff]  }
  0x54   : > { %1853 = vmatpush3.bf16.msra.mxu0 %v2126_v40  ;;  %2041 = vmatpush3.bf16.msra.mxu1 %v2126_v40  ;;  %v2175_v11 = vld [vmem:[%s2416_s15 + $0x60] ss:$8 sps:$4 sm:$0xff]   ;;  %v2177_v13 = vld [vmem:[%s2416_s15 + $0x74] ss:$8 sps:$4 sm:$0xff]   ;;  %v2181_v15 = vld [vmem:[%s2416_s15 + $0x70] ss:$8 sps:$4 sm:$0xff]  }
  0x55   : > { %1854 = vmatprep.subr.bf16.mxu0 %v2127_v41  ;;  %2034 = vmatprep.subr.bf16.mxu1 %v2127_v41  ;;  %v2176_v12 = vld [vmem:[%s2416_s15 + $0xe0] ss:$8 sps:$4 sm:$0xff]   ;;  %v2179_v14 = vld [vmem:[%s2416_s15 + $0xf4] ss:$8 sps:$4 sm:$0xff]   ;;  %v2182_v16 = vld [vmem:[%s2416_s15 + $0xf0] ss:$8 sps:$4 sm:$0xff]  }
  0x56   : > { %v436_v19 = vld [vmem:[#allocation2] sm:$0xff]  ;;  %v437_v27 = vld [vmem:[#allocation2 + $0x8] sm:$0xff]  ;;  %v438_v39 = vld [vmem:[#allocation2 + $0x10] sm:$0xff] }
  0x57   : > { %v452_v21 = vld [vmem:[#allocation2 + $0x80] sm:$0xff]  ;;  %v453_v29 = vld [vmem:[#allocation2 + $0x88] sm:$0xff]  ;;  %v454_v41 = vld [vmem:[#allocation2 + $0x90] sm:$0xff] }
  0x58   : > { %1855 = vmatpush3.bf16.msra.mxu0 %v2128_v42  ;;  %2042 = vmatpush3.bf16.msra.mxu1 %v2128_v42 }
  0x59   : > { %1856 = vmatprep.subr.bf16.mxu0 %v2129_v43  ;;  %2035 = vmatprep.subr.bf16.mxu1 %v2129_v43 }
  0x5c   : > { %1857 = vmatpush3.bf16.msra.mxu0 %v2130_v46  ;;  %2043 = vmatpush3.bf16.msra.mxu1 %v2130_v46 }
  0x5d   : > { %1858 = vmatprep.subr.bf16.mxu0 %v2131_v47  ;;  %2036 = vmatprep.subr.bf16.mxu1 %v2131_v47  ;;  %v439_v47 = vld [vmem:[#allocation2 + $0x18] sm:$0xff] }
  0x60   : > { %1859 = vmatpush3.bf16.msra.mxu0 %v2132_v48  ;;  %2044 = vmatpush3.bf16.msra.mxu1 %v2132_v48 }
  0x61   : > { %1860 = vmatprep.subr.bf16.mxu0 %v2133_v49  ;;  %2037 = vmatprep.subr.bf16.mxu1 %v2133_v49  ;;  %v455_v49 = vld [vmem:[#allocation2 + $0x98] sm:$0xff] }
  0x64   : > { %1861 = vmatpush3.bf16.msra.mxu0 %v2134_v50  ;;  %2045 = vmatpush3.bf16.msra.mxu1 %v2134_v50 }
  0x67   : > { %821 = vmatmul.mubr.bf16.vlgmr.msra.gmra.mrb[0].mxu0 %v2135_v51  ;;  %885 = vmatmul.mubr.bf16.vlgmr.msra.gmra.mrb[0].mxu1 %v2138_v52 }
  0x68   : > { %828 = vmatprep.mubr.bf16.mxu0 %v2141_v53  ;;  %892 = vmatprep.mubr.bf16.mxu1 %v2143_v54 }
  0x6f   : > { %829 = vmatmul.mubr.bf16.gmra.mrb[4].mxu0 %v2145_v55  ;;  %893 = vmatmul.mubr.bf16.gmra.mrb[4].mxu1 %v2146_v56 }
  0x70   : > { %836 = vmatprep.mubr.bf16.mxu0 %v2147_v57  ;;  %900 = vmatprep.mubr.bf16.mxu1 %v2149_v58 }
  0x77   : > { %837 = vmatmul.mubr.bf16.gmra.mrb[8].mxu0 %v2151_v59  ;;  %901 = vmatmul.mubr.bf16.gmra.mrb[8].mxu1 %v2152_v60  ;;  %v440_v59 = vld [vmem:[#allocation2 + $0x20] sm:$0xff] }
  0x78   : > { %844 = vmatprep.mubr.bf16.mxu0 %v2153_v61  ;;  %908 = vmatprep.mubr.bf16.mxu1 %v2155_v62  ;;  %v456_v61 = vld [vmem:[#allocation2 + $0xa0] sm:$0xff] }
  0x7f   : > { %845 = vmatmul.mubr.bf16.gmra.mrb[12].mxu0 %v2157_v63  ;;  %909 = vmatmul.mubr.bf16.gmra.mrb[12].mxu1 %v2158_v0 }
  0x80   : > { %852 = vmatprep.mubr.bf16.mxu0 %v2159_v1  ;;  %916 = vmatprep.mubr.bf16.mxu1 %v2161_v2 }
  0x87   : > { %853 = vmatmul.mubr.bf16.gmra.mrb[16].mxu0 %v2163_v3  ;;  %917 = vmatmul.mubr.bf16.gmra.mrb[16].mxu1 %v2164_v4  ;;  %v441_v3 = vld [vmem:[#allocation2 + $0x28] sm:$0xff] }
  0x88   : > { %860 = vmatprep.mubr.bf16.mxu0 %v2165_v5  ;;  %924 = vmatprep.mubr.bf16.mxu1 %v2167_v6  ;;  %v457_v5 = vld [vmem:[#allocation2 + $0xa8] sm:$0xff] }
  0x8f   : > { %861 = vmatmul.mubr.bf16.gmra.mrb[20].mxu0 %v2169_v7  ;;  %925 = vmatmul.mubr.bf16.gmra.mrb[20].mxu1 %v2170_v8 }
  0x90   : > { %868 = vmatprep.mubr.bf16.mxu0 %v2171_v9  ;;  %932 = vmatprep.mubr.bf16.mxu1 %v2173_v10 }
  0x97   : > { %869 = vmatmul.mubr.bf16.gmra.mrb[24].mxu0 %v2175_v11  ;;  %933 = vmatmul.mubr.bf16.gmra.mrb[24].mxu1 %v2176_v12 }
  0x98   : > { %876 = vmatprep.mubr.bf16.mxu0 %v2177_v13  ;;  %940 = vmatprep.mubr.bf16.mxu1 %v2179_v14 }
  0x9f   : > { %877 = vmatmul.mubr.bf16.gmra.mrb[28].mxu0 %v2181_v15  ;;  %941 = vmatmul.mubr.bf16.gmra.mrb[28].mxu1 %v2182_v16  ;;  %v442_v15 = vld [vmem:[#allocation2 + $0x30] sm:$0xff] }
 0x13a   : > { %v1862_v17 = vpop.f32.mrb[0].mxu0  ;;  %v1910_v18 = vpop.f32.mrb[0].mxu1 }
 0x13b   : > { %v1863_v20 = vpop.f32.mrb[1].mxu0  ;;  %v1911_v22 = vpop.f32.mrb[1].mxu1 }
 0x13c   : > { %v1864_v23 = vadd.f32 %v1863_v20, %v1862_v17  ;;  %v1912_v24 = vadd.f32 %v1911_v22, %v1910_v18  ;;  %v1865_v25 = vpop.f32.mrb[2].mxu0  ;;  %v1913_v26 = vpop.f32.mrb[2].mxu1  ;;  %v458_v17 = vld [vmem:[#allocation2 + $0xb0] sm:$0xff] }
 0x13d   : > { %v1866_v28 = vpop.f32.mrb[3].mxu0  ;;  %v1914_v30 = vpop.f32.mrb[3].mxu1 }
 0x13e   : > { %v949_v31 = vadd.f32 %v1864_v23, %v436_v19  ;;  %v965_v32 = vadd.f32 %v1912_v24, %v452_v21  ;;  %v1867_v33 = vadd.f32 %v1866_v28, %v1865_v25  ;;  %v1915_v34 = vadd.f32 %v1914_v30, %v1913_v26  ;;  %v443_v23 = vld [vmem:[#allocation2 + $0x38] sm:$0xff] }
 0x13f   : > { %v459_v25 = vld [vmem:[#allocation2 + $0xb8] sm:$0xff] }
 0x140   : > { %981 = vst [vmem:[#allocation2] sm:$0xff] %v949_v31  ;;  %997 = vst [vmem:[#allocation2 + $0x80] sm:$0xff] %v965_v32  ;;  %v950_v35 = vadd.f32 %v1867_v33, %v437_v27  ;;  %v966_v36 = vadd.f32 %v1915_v34, %v453_v29 }
 0x142   : > { %982 = vst [vmem:[#allocation2 + $0x8] sm:$0xff] %v950_v35  ;;  %998 = vst [vmem:[#allocation2 + $0x88] sm:$0xff] %v966_v36  ;;  %v1868_v37 = vpop.f32.mrb[4].mxu0  ;;  %v1916_v38 = vpop.f32.mrb[4].mxu1  ;;  %v444_v35 = vld [vmem:[#allocation2 + $0x40] sm:$0xff] }
 0x143   : > { %v1869_v40 = vpop.f32.mrb[5].mxu0  ;;  %v1917_v42 = vpop.f32.mrb[5].mxu1 }
 0x144   : > { %v1870_v43 = vadd.f32 %v1869_v40, %v1868_v37  ;;  %v1918_v44 = vadd.f32 %v1917_v42, %v1916_v38  ;;  %v1871_v45 = vpop.f32.mrb[6].mxu0  ;;  %v1919_v46 = vpop.f32.mrb[6].mxu1  ;;  %v460_v37 = vld [vmem:[#allocation2 + $0xc0] sm:$0xff] }
 0x145   : > { %v1872_v48 = vpop.f32.mrb[7].mxu0  ;;  %v1920_v50 = vpop.f32.mrb[7].mxu1 }
 0x146   : > { %v951_v51 = vadd.f32 %v1870_v43, %v438_v39  ;;  %v967_v52 = vadd.f32 %v1918_v44, %v454_v41  ;;  %v1873_v53 = vadd.f32 %v1872_v48, %v1871_v45  ;;  %v1921_v54 = vadd.f32 %v1920_v50, %v1919_v46  ;;  %v445_v43 = vld [vmem:[#allocation2 + $0x48] sm:$0xff] }
 0x147   : > { %v461_v45 = vld [vmem:[#allocation2 + $0xc8] sm:$0xff] }
 0x148   : > { %983 = vst [vmem:[#allocation2 + $0x10] sm:$0xff] %v951_v51  ;;  %999 = vst [vmem:[#allocation2 + $0x90] sm:$0xff] %v967_v52  ;;  %v952_v55 = vadd.f32 %v1873_v53, %v439_v47  ;;  %v968_v56 = vadd.f32 %v1921_v54, %v455_v49 }
 0x14a   : > { %984 = vst [vmem:[#allocation2 + $0x18] sm:$0xff] %v952_v55  ;;  %1000 = vst [vmem:[#allocation2 + $0x98] sm:$0xff] %v968_v56  ;;  %v1874_v57 = vpop.f32.mrb[8].mxu0  ;;  %v1922_v58 = vpop.f32.mrb[8].mxu1  ;;  %v446_v55 = vld [vmem:[#allocation2 + $0x50] sm:$0xff] }
 0x14b   : > { %v1875_v60 = vpop.f32.mrb[9].mxu0  ;;  %v1923_v62 = vpop.f32.mrb[9].mxu1 }
 0x14c   : > { %v1876_v63 = vadd.f32 %v1875_v60, %v1874_v57  ;;  %v1924_v0 = vadd.f32 %v1923_v62, %v1922_v58  ;;  %v1877_v1 = vpop.f32.mrb[10].mxu0  ;;  %v1925_v2 = vpop.f32.mrb[10].mxu1  ;;  %v462_v57 = vld [vmem:[#allocation2 + $0xd0] sm:$0xff] }
 0x14d   : > { %v1878_v4 = vpop.f32.mrb[11].mxu0  ;;  %v1926_v6 = vpop.f32.mrb[11].mxu1 }
 0x14e   : > { %v953_v7 = vadd.f32 %v1876_v63, %v440_v59  ;;  %v969_v8 = vadd.f32 %v1924_v0, %v456_v61  ;;  %v1879_v9 = vadd.f32 %v1878_v4, %v1877_v1  ;;  %v1927_v10 = vadd.f32 %v1926_v6, %v1925_v2  ;;  %v447_v63 = vld [vmem:[#allocation2 + $0x58] sm:$0xff] }
 0x14f   : > { %v463_v1 = vld [vmem:[#allocation2 + $0xd8] sm:$0xff] }
 0x150   : > { %985 = vst [vmem:[#allocation2 + $0x20] sm:$0xff] %v953_v7  ;;  %1001 = vst [vmem:[#allocation2 + $0xa0] sm:$0xff] %v969_v8  ;;  %v954_v11 = vadd.f32 %v1879_v9, %v441_v3  ;;  %v970_v12 = vadd.f32 %v1927_v10, %v457_v5 }
 0x152   : > { %986 = vst [vmem:[#allocation2 + $0x28] sm:$0xff] %v954_v11  ;;  %1002 = vst [vmem:[#allocation2 + $0xa8] sm:$0xff] %v970_v12  ;;  %v1880_v13 = vpop.f32.mrb[12].mxu0  ;;  %v1928_v14 = vpop.f32.mrb[12].mxu1  ;;  %v448_v11 = vld [vmem:[#allocation2 + $0x60] sm:$0xff] }
 0x153   : > { %v1881_v16 = vpop.f32.mrb[13].mxu0  ;;  %v1929_v18 = vpop.f32.mrb[13].mxu1 }
 0x154   : > { %v1882_v19 = vadd.f32 %v1881_v16, %v1880_v13  ;;  %v1930_v20 = vadd.f32 %v1929_v18, %v1928_v14  ;;  %v1883_v21 = vpop.f32.mrb[14].mxu0  ;;  %v1931_v22 = vpop.f32.mrb[14].mxu1  ;;  %v464_v13 = vld [vmem:[#allocation2 + $0xe0] sm:$0xff] }
 0x155   : > { %v1884_v24 = vpop.f32.mrb[15].mxu0  ;;  %v1932_v26 = vpop.f32.mrb[15].mxu1 }
 0x156   : > { %v955_v27 = vadd.f32 %v1882_v19, %v442_v15  ;;  %v971_v28 = vadd.f32 %v1930_v20, %v458_v17  ;;  %v1885_v29 = vadd.f32 %v1884_v24, %v1883_v21  ;;  %v1933_v30 = vadd.f32 %v1932_v26, %v1931_v22  ;;  %v449_v19 = vld [vmem:[#allocation2 + $0x68] sm:$0xff] }
 0x157   : > { %v465_v21 = vld [vmem:[#allocation2 + $0xe8] sm:$0xff] }
 0x158   : > { %987 = vst [vmem:[#allocation2 + $0x30] sm:$0xff] %v955_v27  ;;  %1003 = vst [vmem:[#allocation2 + $0xb0] sm:$0xff] %v971_v28  ;;  %v956_v31 = vadd.f32 %v1885_v29, %v443_v23  ;;  %v972_v32 = vadd.f32 %v1933_v30, %v459_v25 }
 0x15a   : > { %988 = vst [vmem:[#allocation2 + $0x38] sm:$0xff] %v956_v31  ;;  %1004 = vst [vmem:[#allocation2 + $0xb8] sm:$0xff] %v972_v32  ;;  %v1886_v33 = vpop.f32.mrb[16].mxu0  ;;  %v1934_v34 = vpop.f32.mrb[16].mxu1  ;;  %v450_v31 = vld [vmem:[#allocation2 + $0x70] sm:$0xff] }
 0x15b   : > { %v1887_v36 = vpop.f32.mrb[17].mxu0  ;;  %v1935_v38 = vpop.f32.mrb[17].mxu1 }
 0x15c   : > { %v1888_v39 = vadd.f32 %v1887_v36, %v1886_v33  ;;  %v1936_v40 = vadd.f32 %v1935_v38, %v1934_v34  ;;  %v1889_v41 = vpop.f32.mrb[18].mxu0  ;;  %v1937_v42 = vpop.f32.mrb[18].mxu1  ;;  %v466_v33 = vld [vmem:[#allocation2 + $0xf0] sm:$0xff] }
 0x15d   : > { %v1890_v44 = vpop.f32.mrb[19].mxu0  ;;  %v1938_v46 = vpop.f32.mrb[19].mxu1 }
 0x15e   : > { %v957_v47 = vadd.f32 %v1888_v39, %v444_v35  ;;  %v973_v48 = vadd.f32 %v1936_v40, %v460_v37  ;;  %v1891_v49 = vadd.f32 %v1890_v44, %v1889_v41  ;;  %v1939_v50 = vadd.f32 %v1938_v46, %v1937_v42  ;;  %v451_v39 = vld [vmem:[#allocation2 + $0x78] sm:$0xff] }
 0x15f   : > { %v467_v41 = vld [vmem:[#allocation2 + $0xf8] sm:$0xff] }
 0x160   : > { %989 = vst [vmem:[#allocation2 + $0x40] sm:$0xff] %v957_v47  ;;  %1005 = vst [vmem:[#allocation2 + $0xc0] sm:$0xff] %v973_v48  ;;  %v958_v51 = vadd.f32 %v1891_v49, %v445_v43  ;;  %v974_v52 = vadd.f32 %v1939_v50, %v461_v45  ;;  %v2183_v49 = vld [vmem:[%s2569_s3] sm:$0xff] (!%p1674_p13)   ;;  %v2184_v50 = vld [vmem:[%s2569_s3 + $0x8] sm:$0xff] (!%p1674_p13)  }
 0x161   : > { %1982 = vmatprep.subr.bf16.mxu0 (!%p1674_p13), %v2183_v49  ;;  %2046 = vmatprep.subr.bf16.mxu1 (!%p1674_p13), %v2183_v49 }
 0x162   : > { %990 = vst [vmem:[#allocation2 + $0x48] sm:$0xff] %v958_v51  ;;  %1006 = vst [vmem:[#allocation2 + $0xc8] sm:$0xff] %v974_v52  ;;  %v1892_v53 = vpop.f32.mrb[20].mxu0  ;;  %v1940_v54 = vpop.f32.mrb[20].mxu1  ;;  %1983 = vmatpush3.bf16.msra.mxu0 (!%p1674_p13), %v2183_v49  ;;  %2054 = vmatpush3.bf16.msra.mxu1 (!%p1674_p13), %v2183_v49  ;;  %v2185_v51 = vld [vmem:[%s2569_s3 + $0x10] sm:$0xff] (!%p1674_p13)   ;;  %v2186_v52 = vld [vmem:[%s2569_s3 + $0x18] sm:$0xff] (!%p1674_p13)  }
 0x163   : > { %v1893_v56 = vpop.f32.mrb[21].mxu0  ;;  %v1941_v58 = vpop.f32.mrb[21].mxu1  ;;  %1984 = vmatprep.subr.bf16.mxu0 (!%p1674_p13), %v2184_v50  ;;  %2047 = vmatprep.subr.bf16.mxu1 (!%p1674_p13), %v2184_v50 }
 0x164   : > { %v1894_v59 = vadd.f32 %v1893_v56, %v1892_v53  ;;  %v1942_v60 = vadd.f32 %v1941_v58, %v1940_v54  ;;  %v1895_v61 = vpop.f32.mrb[22].mxu0  ;;  %v1943_v62 = vpop.f32.mrb[22].mxu1  ;;  %v1017_v53 = vld [vmem:[#allocation2] sm:$0xff] (!%p1674_p13)  ;;  %v1018_v54 = vld [vmem:[#allocation2 + $0x8] sm:$0xff] (!%p1674_p13) }
 0x165   : > { %v1896_v0 = vpop.f32.mrb[23].mxu0  ;;  %v1944_v2 = vpop.f32.mrb[23].mxu1  ;;  %v1033_v58 = vld [vmem:[#allocation2 + $0x80] sm:$0xff] (!%p1674_p13) }
 0x166   : > { %v959_v3 = vadd.f32 %v1894_v59, %v446_v55  ;;  %v975_v4 = vadd.f32 %v1942_v60, %v462_v57  ;;  %v1897_v5 = vadd.f32 %v1896_v0, %v1895_v61  ;;  %v1945_v6 = vadd.f32 %v1944_v2, %v1943_v62  ;;  %1985 = vmatpush3.bf16.msra.mxu0 (!%p1674_p13), %v2184_v50  ;;  %v2483_v55 = vld [vmem:[%s2568_s2] ss:$0 sm:$0xff] (!%p1674_p13)  ;;  %v1034_v59 = vld [vmem:[#allocation2 + $0x88] sm:$0xff] (!%p1674_p13) }
 0x167   : > { %2055 = vmatpush3.bf16.msra.mxu1 (!%p1674_p13), %v2184_v50  ;;  %1986 = vmatprep.subr.bf16.mxu0 (!%p1674_p13), %v2185_v51  ;;  %v1056_v56 = vadd.f32 (!%p1674_p13), %v2483_v55, %v1017_v53  ;;  %v1057_v57 = vadd.f32 (!%p1674_p13), %v2483_v55, %v1018_v54  ;;  %v1072_v60 = vadd.f32 (!%p1674_p13), %v2483_v55, %v1033_v58  ;;  %v2187_v0 = vld [vmem:[%s2569_s3 + $0x20] sm:$0xff] (!%p1674_p13)  }
 0x168   : > { %991 = vst [vmem:[#allocation2 + $0x50] sm:$0xff] %v959_v3  ;;  %1007 = vst [vmem:[#allocation2 + $0xd0] sm:$0xff] %v975_v4  ;;  %v960_v7 = vadd.f32 %v1897_v5, %v447_v63  ;;  %v976_v8 = vadd.f32 %v1945_v6, %v463_v1  ;;  %2048 = vmatprep.subr.bf16.mxu1 (!%p1674_p13), %v2185_v51  ;;  %v1073_v61 = vadd.f32 (!%p1674_p13), %v2483_v55, %v1034_v59  ;;  %v2188_v5 = vld [vmem:[%s2569_s3 + $0x28] sm:$0xff] (!%p1674_p13)   ;;  %v1019_v6 = vld [vmem:[#allocation2 + $0x10] sm:$0xff] (!%p1674_p13) }
 0x169   : > { %v1088_v62 = vmax.f32 (!%p1674_p13), %v1056_v56, 0.0  ;;  %v1089_v63 = vmax.f32 (!%p1674_p13), %v1057_v57, 0.0  ;;  %v1104_v1 = vmax.f32 (!%p1674_p13), %v1072_v60, 0.0 }
 0x16a   : > { %992 = vst [vmem:[#allocation2 + $0x58] sm:$0xff] %v960_v7  ;;  %1008 = vst [vmem:[#allocation2 + $0xd8] sm:$0xff] %v976_v8  ;;  %v1898_v9 = vpop.f32.mrb[24].mxu0  ;;  %v1946_v10 = vpop.f32.mrb[24].mxu1  ;;  %1987 = vmatpush3.bf16.msra.mxu0 (!%p1674_p13), %v2185_v51  ;;  %v1105_v2 = vmax.f32 (!%p1674_p13), %v1073_v61, 0.0  ;;  %v1020_v7 = vld [vmem:[#allocation2 + $0x18] sm:$0xff] (!%p1674_p13) }
 0x16b   : > { %v1899_v12 = vpop.f32.mrb[25].mxu0  ;;  %v1947_v14 = vpop.f32.mrb[25].mxu1  ;;  %2056 = vmatpush3.bf16.msra.mxu1 (!%p1674_p13), %v2185_v51  ;;  %1988 = vmatprep.subr.bf16.mxu0 (!%p1674_p13), %v2186_v52  ;;  %v1120_v3 = vpack.c.bf16 (!%p1674_p13), %v1089_v63, %v1088_v62  ;;  %v1035_v8 = vld [vmem:[#allocation2 + $0x90] sm:$0xff] (!%p1674_p13) }
 0x16c   : > { %v1900_v15 = vadd.f32 %v1899_v12, %v1898_v9  ;;  %v1948_v16 = vadd.f32 %v1947_v14, %v1946_v10  ;;  %v1901_v17 = vpop.f32.mrb[26].mxu0  ;;  %v1949_v18 = vpop.f32.mrb[26].mxu1  ;;  %2049 = vmatprep.subr.bf16.mxu1 (!%p1674_p13), %v2186_v52  ;;  %v1128_v4 = vpack.c.bf16 (!%p1674_p13), %v1105_v2, %v1104_v1  ;;  %v1036_v9 = vld [vmem:[#allocation2 + $0x98] sm:$0xff] (!%p1674_p13)  ;;  %v1021_v10 = vld [vmem:[#allocation2 + $0x20] sm:$0xff] (!%p1674_p13)  ;;  %v2189_v12 = vld [vmem:[%s2569_s3 + $0x30] sm:$0xff] (!%p1674_p13)   ;;  %v1059_v14 = vadd.f32 (!%p1674_p13), %v2483_v55, %v1020_v7 }
 0x16d   : > { %v1902_v20 = vpop.f32.mrb[27].mxu0  ;;  %v1950_v22 = vpop.f32.mrb[27].mxu1  ;;  %1998 = vmatprep.mubr.bf16.mxu0 (!%p1674_p13), %v1120_v3 }
 0x16e   : > { %v961_v23 = vadd.f32 %v1900_v15, %v448_v11  ;;  %v977_v24 = vadd.f32 %v1948_v16, %v464_v13  ;;  %v1903_v25 = vadd.f32 %v1902_v20, %v1901_v17  ;;  %v1951_v26 = vadd.f32 %v1950_v22, %v1949_v18  ;;  %1989 = vmatpush3.bf16.msra.mxu0 (!%p1674_p13), %v2186_v52  ;;  %v1022_v11 = vld [vmem:[#allocation2 + $0x28] sm:$0xff] (!%p1674_p13)  ;;  %v1037_v15 = vld [vmem:[#allocation2 + $0xa0] sm:$0xff] (!%p1674_p13) }
 0x16f   : > { %2057 = vmatpush3.bf16.msra.mxu1 (!%p1674_p13), %v2186_v52  ;;  %1990 = vmatprep.subr.bf16.mxu0 (!%p1674_p13), %v2187_v0  ;;  %v1058_v13 = vadd.f32 (!%p1674_p13), %v2483_v55, %v1019_v6  ;;  %v1038_v16 = vld [vmem:[#allocation2 + $0xa8] sm:$0xff] (!%p1674_p13)  ;;  %v1074_v17 = vadd.f32 (!%p1674_p13), %v2483_v55, %v1035_v8  ;;  %v1075_v18 = vadd.f32 (!%p1674_p13), %v2483_v55, %v1036_v9  ;;  %v1027_v54 = vld [vmem:[#allocation2 + $0x50] sm:$0xff] (!%p1674_p13) }
 0x170   : > { %993 = vst [vmem:[#allocation2 + $0x60] sm:$0xff] %v961_v23  ;;  %1009 = vst [vmem:[#allocation2 + $0xe0] sm:$0xff] %v977_v24  ;;  %v962_v27 = vadd.f32 %v1903_v25, %v449_v19  ;;  %v978_v28 = vadd.f32 %v1951_v26, %v465_v21  ;;  %2050 = vmatprep.subr.bf16.mxu1 (!%p1674_p13), %v2187_v0  ;;  %2014 = vmatprep.mubr.bf16.mxu1 (!%p1674_p13), %v1128_v4  ;;  %v2190_v23 = vld [vmem:[%s2569_s3 + $0x38] sm:$0xff] (!%p1674_p13)   ;;  %v1091_v25 = vmax.f32 (!%p1674_p13), %v1059_v14, 0.0  ;;  %v1043_v61 = vld [vmem:[#allocation2 + $0xd0] sm:$0xff] (!%p1674_p13) }
 0x171   : > { %v1060_v19 = vadd.f32 (!%p1674_p13), %v2483_v55, %v1021_v10  ;;  %v1061_v20 = vadd.f32 (!%p1674_p13), %v2483_v55, %v1022_v11  ;;  %v1076_v21 = vadd.f32 (!%p1674_p13), %v2483_v55, %v1037_v15  ;;  %v1077_v22 = vadd.f32 (!%p1674_p13), %v2483_v55, %v1038_v16  ;;  %v1028_v56 = vld [vmem:[#allocation2 + $0x58] sm:$0xff] (!%p1674_p13) }
 0x172   : > { %994 = vst [vmem:[#allocation2 + $0x68] sm:$0xff] %v962_v27  ;;  %1010 = vst [vmem:[#allocation2 + $0xe8] sm:$0xff] %v978_v28  ;;  %v1904_v29 = vpop.f32.mrb[28].mxu0  ;;  %v1952_v30 = vpop.f32.mrb[28].mxu1  ;;  %1991 = vmatpush3.bf16.msra.mxu0 (!%p1674_p13), %v2187_v0  ;;  %v1090_v24 = vmax.f32 (!%p1674_p13), %v1058_v13, 0.0  ;;  %v1106_v26 = vmax.f32 (!%p1674_p13), %v1074_v17, 0.0  ;;  %v1067_v6 = vadd.f32 (!%p1674_p13), %v2483_v55, %v1028_v56  ;;  %v1082_v7 = vadd.f32 (!%p1674_p13), %v2483_v55, %v1043_v61 }
 0x173   : > { %v1905_v32 = vpop.f32.mrb[29].mxu0  ;;  %v1953_v34 = vpop.f32.mrb[29].mxu1  ;;  %2058 = vmatpush3.bf16.msra.mxu1 (!%p1674_p13), %v2187_v0  ;;  %1992 = vmatprep.subr.bf16.mxu0 (!%p1674_p13), %v2188_v5  ;;  %v1107_v27 = vmax.f32 (!%p1674_p13), %v1075_v18, 0.0  ;;  %v1092_v28 = vmax.f32 (!%p1674_p13), %v1060_v19, 0.0  ;;  %v1044_v62 = vld [vmem:[#allocation2 + $0xd8] sm:$0xff] (!%p1674_p13) }
 0x174   : > { %v1906_v35 = vadd.f32 %v1905_v32, %v1904_v29  ;;  %v1954_v36 = vadd.f32 %v1953_v34, %v1952_v30  ;;  %v1907_v37 = vpop.f32.mrb[30].mxu0  ;;  %v1955_v38 = vpop.f32.mrb[30].mxu1  ;;  %1016 = sbr.rel (%p1674_p13) target bundleno = 628 (0x274), region = 82  ;;  %2051 = vmatprep.subr.bf16.mxu1 (!%p1674_p13), %v2188_v5  ;;  %v1093_v29 = vmax.f32 (!%p1674_p13), %v1061_v20, 0.0  ;;  %v1023_v30 = vld [vmem:[#allocation2 + $0x30] sm:$0xff] (!%p1674_p13)  ;;  %v1109_v34 = vmax.f32 (!%p1674_p13), %v1077_v22, 0.0 }
 0x175   : > { %v1908_v40 = vpop.f32.mrb[31].mxu0  ;;  %v1956_v42 = vpop.f32.mrb[31].mxu1  ;;  %v1039_v32 = vld [vmem:[#allocation2 + $0xb0] sm:$0xff] (!%p1674_p13)  ;;  %v1083_v8 = vadd.f32 (!%p1674_p13), %v2483_v55, %v1044_v62  ;;  %v1099_v18 = vmax.f32 (!%p1674_p13), %v1067_v6, 0.0  ;;  %v1114_v19 = vmax.f32 (!%p1674_p13), %v1082_v7, 0.0 }
 0x176   : > { %v963_v43 = vadd.f32 %v1906_v35, %v450_v31  ;;  %v979_v44 = vadd.f32 %v1954_v36, %v466_v33  ;;  %v1909_v45 = vadd.f32 %v1908_v40, %v1907_v37  ;;  %v1957_v46 = vadd.f32 %v1956_v42, %v1955_v38  ;;  %1993 = vmatpush3.bf16.msra.mxu0 (!%p1674_p13), %v2188_v5  ;;  %v1024_v31 = vld [vmem:[#allocation2 + $0x38] sm:$0xff] (!%p1674_p13)  ;;  %v1025_v36 = vld [vmem:[#allocation2 + $0x40] sm:$0xff] (!%p1674_p13)  ;;  %v1026_v37 = vld [vmem:[#allocation2 + $0x48] sm:$0xff] (!%p1674_p13) }
 0x177   : > { %2059 = vmatpush3.bf16.msra.mxu1 (!%p1674_p13), %v2188_v5  ;;  %1994 = vmatprep.subr.bf16.mxu0 (!%p1674_p13), %v2189_v12  ;;  %v1108_v33 = vmax.f32 (!%p1674_p13), %v1076_v21, 0.0  ;;  %v1040_v35 = vld [vmem:[#allocation2 + $0xb8] sm:$0xff] (!%p1674_p13)  ;;  %v1121_v38 = vpack.c.bf16 (!%p1674_p13), %v1091_v25, %v1090_v24  ;;  %v1042_v40 = vld [vmem:[#allocation2 + $0xc8] sm:$0xff] (!%p1674_p13)  ;;  %v1062_v42 = vadd.f32 (!%p1674_p13), %v2483_v55, %v1023_v30  ;;  %v1029_v1 = vld [vmem:[#allocation2 + $0x60] sm:$0xff] (!%p1674_p13)  ;;  %v1066_v5 = vadd.f32 (!%p1674_p13), %v2483_v55, %v1027_v54 }
 0x178   : > { %995 = vst [vmem:[#allocation2 + $0x70] sm:$0xff] %v963_v43  ;;  %1011 = vst [vmem:[#allocation2 + $0xf0] sm:$0xff] %v979_v44  ;;  %v964_v47 = vadd.f32 %v1909_v45, %v451_v39  ;;  %v980_v48 = vadd.f32 %v1957_v46, %v467_v41  ;;  %2052 = vmatprep.subr.bf16.mxu1 (!%p1674_p13), %v2189_v12  ;;  %v1041_v39 = vld [vmem:[#allocation2 + $0xc0] sm:$0xff] (!%p1674_p13)  ;;  %v1129_v41 = vpack.c.bf16 (!%p1674_p13), %v1107_v27, %v1106_v26 }
 0x179   : > { %v1063_v43 = vadd.f32 (!%p1674_p13), %v2483_v55, %v1024_v31  ;;  %v1078_v44 = vadd.f32 (!%p1674_p13), %v2483_v55, %v1039_v32  ;;  %v1122_v45 = vpack.c.bf16 (!%p1674_p13), %v1093_v29, %v1092_v28  ;;  %v1079_v46 = vadd.f32 (!%p1674_p13), %v2483_v55, %v1040_v35  ;;  %v1030_v2 = vld [vmem:[#allocation2 + $0x68] sm:$0xff] (!%p1674_p13)  ;;  %v1045_v3 = vld [vmem:[#allocation2 + $0xe0] sm:$0xff] (!%p1674_p13) }
 0x17a   : > { %996 = vst [vmem:[#allocation2 + $0x78] sm:$0xff] %v964_v47  ;;  %1012 = vst [vmem:[#allocation2 + $0xf8] sm:$0xff] %v980_v48  ;;  %1995 = vmatpush3.bf16.msra.mxu0 (!%p1674_p13), %v2189_v12  ;;  %v1064_v47 = vadd.f32 (!%p1674_p13), %v2483_v55, %v1025_v36  ;;  %v1065_v48 = vadd.f32 (!%p1674_p13), %v2483_v55, %v1026_v37  ;;  %v1130_v49 = vpack.c.bf16 (!%p1674_p13), %v1109_v34, %v1108_v33  ;;  %v1046_v4 = vld [vmem:[#allocation2 + $0xe8] sm:$0xff] (!%p1674_p13) }
 0x17b   : > { %2060 = vmatpush3.bf16.msra.mxu1 %v2189_v12  ;;  %1996 = vmatprep.subr.bf16.mxu0 %v2190_v23  ;;  %v1080_v50 = vadd.f32 %v2483_v55, %v1041_v39  ;;  %v1081_v51 = vadd.f32 %v2483_v55, %v1042_v40  ;;  %v1094_v52 = vmax.f32 %v1062_v42, 0.0  ;;  %v1095_v53 = vmax.f32 %v1063_v43, 0.0 }
 0x17c   : > { %2053 = vmatprep.subr.bf16.mxu1 %v2190_v23  ;;  %v1110_v57 = vmax.f32 %v1078_v44, 0.0  ;;  %v1111_v58 = vmax.f32 %v1079_v46, 0.0  ;;  %v1096_v59 = vmax.f32 %v1064_v47, 0.0  ;;  %v1097_v60 = vmax.f32 %v1065_v48, 0.0 }
 0x17d   : > { %v1112_v63 = vmax.f32 %v1080_v50, 0.0  ;;  %v1113_v0 = vmax.f32 %v1081_v51, 0.0  ;;  %v1123_v9 = vpack.c.bf16 %v1095_v53, %v1094_v52  ;;  %v1068_v12 = vadd.f32 %v2483_v55, %v1029_v1 }
 0x17e   : > { %1997 = vmatpush3.bf16.msra.mxu0 %v2190_v23  ;;  %v1131_v10 = vpack.c.bf16 %v1111_v58, %v1110_v57  ;;  %v1124_v11 = vpack.c.bf16 %v1097_v60, %v1096_v59  ;;  %v1069_v14 = vadd.f32 %v2483_v55, %v1030_v2  ;;  %v1084_v15 = vadd.f32 %v2483_v55, %v1045_v3 }
 0x17f   : > { %2061 = vmatpush3.bf16.msra.mxu1 %v2190_v23  ;;  %v1132_v13 = vpack.c.bf16 %v1113_v0, %v1112_v63  ;;  %v1085_v16 = vadd.f32 %v2483_v55, %v1046_v4  ;;  %v1098_v17 = vmax.f32 %v1066_v5, 0.0  ;;  %v1115_v20 = vmax.f32 %v1083_v8, 0.0  ;;  %v1031_v21 = vld [vmem:[#allocation2 + $0x70] sm:$0xff] }
 0x180   : > { %v1100_v23 = vmax.f32 %v1068_v12, 0.0  ;;  %v1101_v24 = vmax.f32 %v1069_v14, 0.0  ;;  %v1116_v25 = vmax.f32 %v1084_v15, 0.0  ;;  %v1047_v27 = vld [vmem:[#allocation2 + $0xf0] sm:$0xff]  ;;  %v1070_v31 = vadd.f32 %v2483_v55, %v1031_v21 }
 0x181   : > { %1999 = vmatmul.mubr.bf16.vlgmr.msra.gmra.mrb[0].mxu0 %v1121_v38  ;;  %v1032_v22 = vld [vmem:[#allocation2 + $0x78] sm:$0xff]  ;;  %v1117_v26 = vmax.f32 %v1085_v16, 0.0  ;;  %v1125_v29 = vpack.c.bf16 %v1099_v18, %v1098_v17  ;;  %v1133_v30 = vpack.c.bf16 %v1115_v20, %v1114_v19  ;;  %v1086_v33 = vadd.f32 %v2483_v55, %v1047_v27 }
 0x182   : > { %2015 = vmatmul.mubr.bf16.vlgmr.msra.gmra.mrb[0].mxu1 %v1129_v41  ;;  %2002 = vmatprep.mubr.bf16.mxu0 %v1122_v45  ;;  %v1048_v28 = vld [vmem:[#allocation2 + $0xf8] sm:$0xff]  ;;  %v1071_v32 = vadd.f32 %v2483_v55, %v1032_v22  ;;  %v1126_v35 = vpack.c.bf16 %v1101_v24, %v1100_v23  ;;  %v1102_v37 = vmax.f32 %v1070_v31, 0.0 }
 0x183   : > { %2018 = vmatprep.mubr.bf16.mxu1 %v1130_v49  ;;  %v1087_v34 = vadd.f32 %v2483_v55, %v1048_v28  ;;  %v1134_v36 = vpack.c.bf16 %v1117_v26, %v1116_v25  ;;  %v1118_v39 = vmax.f32 %v1086_v33, 0.0 }
 0x184   : > { %v1103_v38 = vmax.f32 %v1071_v32, 0.0 }
 0x185   : > { %v1119_v40 = vmax.f32 %v1087_v34, 0.0 }
 0x186   : > { %v1127_v41 = vpack.c.bf16 %v1103_v38, %v1102_v37 }
 0x187   : > { %v1135_v42 = vpack.c.bf16 %v1119_v40, %v1118_v39 }
 0x189   : > { %2003 = vmatmul.mubr.bf16.gmra.mrb[4].mxu0 %v1123_v9 }
 0x18a   : > { %2019 = vmatmul.mubr.bf16.gmra.mrb[4].mxu1 %v1131_v10  ;;  %2006 = vmatprep.mubr.bf16.mxu0 %v1124_v11 }
 0x18b   : > { %2022 = vmatprep.mubr.bf16.mxu1 %v1132_v13 }
 0x191   : > { %2007 = vmatmul.mubr.bf16.gmra.mrb[8].mxu0 %v1125_v29 }
 0x192   : > { %2023 = vmatmul.mubr.bf16.gmra.mrb[8].mxu1 %v1133_v30  ;;  %2010 = vmatprep.mubr.bf16.mxu0 %v1126_v35 }
 0x193   : > { %2026 = vmatprep.mubr.bf16.mxu1 %v1134_v36 }
 0x199   : > { %2011 = vmatmul.mubr.bf16.gmra.mrb[12].mxu0 %v1127_v41 }
 0x19a   : > { %2027 = vmatmul.mubr.bf16.gmra.mrb[12].mxu1 %v1135_v42 }
 0x254   : > { %v2000_v43 = vpop.f32.mrb[0].mxu0 }
 0x255   : > { %v2016_v55 = vpop.f32.mrb[0].mxu1  ;;  %v1234_v44 = vpop.f32.mrb[1].mxu0 }
 0x256   : > { %v1298_v45 = vpop.f32.mrb[1].mxu1  ;;  %v2001_v46 = vpop.f32.mrb[2].mxu0 }
 0x257   : > { %v2017_v47 = vpop.f32.mrb[2].mxu1  ;;  %v1759_v48 = vpack.c.bf16 %v2001_v46, %v2000_v43  ;;  %v1237_v50 = vpop.f32.mrb[3].mxu0 }
 0x258   : > { %v1799_v49 = vpack.c.bf16 %v2017_v47, %v2016_v55  ;;  %v1301_v51 = vpop.f32.mrb[3].mxu1  ;;  %v1754_v52 = vpack.c.bf16 %v1237_v50, %v1234_v44 }
 0x259   : > { %v1794_v53 = vpack.c.bf16 %v1301_v51, %v1298_v45  ;;  %1831 = vst [vmem:[%s2414_s8 + $0x8] sm:$0xff] %v1759_v48  }
 0x25a   : > { %1839 = vst [vmem:[%s2414_s8 + $0x48] sm:$0xff] %v1799_v49   ;;  %1755 = vst [vmem:[%s2414_s8] sm:$0xff] %v1754_v52  }
 0x25b   : > { %1838 = vst [vmem:[%s2414_s8 + $0x40] sm:$0xff] %v1794_v53  }
 0x25c   : > { %v2004_v54 = vpop.f32.mrb[4].mxu0 }
 0x25d   : > { %v2020_v56 = vpop.f32.mrb[4].mxu1  ;;  %v1250_v57 = vpop.f32.mrb[5].mxu0 }
 0x25e   : > { %v1314_v58 = vpop.f32.mrb[5].mxu1  ;;  %v2005_v59 = vpop.f32.mrb[6].mxu0 }
 0x25f   : > { %v2021_v60 = vpop.f32.mrb[6].mxu1  ;;  %v1769_v61 = vpack.c.bf16 %v2005_v59, %v2004_v54  ;;  %v1253_v63 = vpop.f32.mrb[7].mxu0 }
 0x260   : > { %v1809_v62 = vpack.c.bf16 %v2021_v60, %v2020_v56  ;;  %v1317_v0 = vpop.f32.mrb[7].mxu1  ;;  %v1764_v1 = vpack.c.bf16 %v1253_v63, %v1250_v57 }
 0x261   : > { %v1804_v2 = vpack.c.bf16 %v1317_v0, %v1314_v58  ;;  %1833 = vst [vmem:[%s2414_s8 + $0x18] sm:$0xff] %v1769_v61  }
 0x262   : > { %1841 = vst [vmem:[%s2414_s8 + $0x58] sm:$0xff] %v1809_v62   ;;  %1832 = vst [vmem:[%s2414_s8 + $0x10] sm:$0xff] %v1764_v1  }
 0x263   : > { %1840 = vst [vmem:[%s2414_s8 + $0x50] sm:$0xff] %v1804_v2  }
 0x264   : > { %v2008_v3 = vpop.f32.mrb[8].mxu0 }
 0x265   : > { %v2024_v4 = vpop.f32.mrb[8].mxu1  ;;  %v1266_v5 = vpop.f32.mrb[9].mxu0 }
 0x266   : > { %v1330_v6 = vpop.f32.mrb[9].mxu1  ;;  %v2009_v7 = vpop.f32.mrb[10].mxu0 }
 0x267   : > { %v2025_v8 = vpop.f32.mrb[10].mxu1  ;;  %v1779_v9 = vpack.c.bf16 %v2009_v7, %v2008_v3  ;;  %v1269_v11 = vpop.f32.mrb[11].mxu0 }
 0x268   : > { %v1819_v10 = vpack.c.bf16 %v2025_v8, %v2024_v4  ;;  %v1333_v12 = vpop.f32.mrb[11].mxu1  ;;  %v1774_v13 = vpack.c.bf16 %v1269_v11, %v1266_v5 }
 0x269   : > { %v1814_v14 = vpack.c.bf16 %v1333_v12, %v1330_v6  ;;  %1835 = vst [vmem:[%s2414_s8 + $0x28] sm:$0xff] %v1779_v9  }
 0x26a   : > { %1843 = vst [vmem:[%s2414_s8 + $0x68] sm:$0xff] %v1819_v10   ;;  %1834 = vst [vmem:[%s2414_s8 + $0x20] sm:$0xff] %v1774_v13  }
 0x26b   : > { %1842 = vst [vmem:[%s2414_s8 + $0x60] sm:$0xff] %v1814_v14  }
 0x26c   : > { %v2012_v15 = vpop.f32.mrb[12].mxu0 }
 0x26d   : > { %v2028_v16 = vpop.f32.mrb[12].mxu1  ;;  %v1282_v17 = vpop.f32.mrb[13].mxu0 }
 0x26e   : > { %v1346_v18 = vpop.f32.mrb[13].mxu1  ;;  %v2013_v19 = vpop.f32.mrb[14].mxu0 }
 0x26f   : > { %v2029_v20 = vpop.f32.mrb[14].mxu1  ;;  %v1789_v21 = vpack.c.bf16 %v2013_v19, %v2012_v15  ;;  %v1285_v23 = vpop.f32.mrb[15].mxu0 }
 0x270   : > { %v1829_v22 = vpack.c.bf16 %v2029_v20, %v2028_v16  ;;  %v1349_v24 = vpop.f32.mrb[15].mxu1  ;;  %v1784_v25 = vpack.c.bf16 %v1285_v23, %v1282_v17 }
 0x271   : > { %v1824_v26 = vpack.c.bf16 %v1349_v24, %v1346_v18  ;;  %1837 = vst [vmem:[%s2414_s8 + $0x38] sm:$0xff] %v1789_v21  }
 0x272   : > { %1845 = vst [vmem:[%s2414_s8 + $0x78] sm:$0xff] %v1829_v22   ;;  %1836 = vst [vmem:[%s2414_s8 + $0x30] sm:$0xff] %v1784_v25  }
 0x273   : > { %1844 = vst [vmem:[%s2414_s8 + $0x70] sm:$0xff] %v1824_v26  }
 0x274 PF: > { %s14_s21 = sadd.s32 1, %s2245_s21   ;;  %s2571_s15 = smov %s2225_s16 }
 0x275   : > { %p11_p0 = scmp.ge.s32.totalorder %s14_s21, 6   ;;  %s2572_s16 = smov %s2324_s28 }
 0x276   : > { %s2573_s17 = smov %s2237_s19  ;;  %s2574_s18 = smov %s2241_s20 }
 0x277   : > { %s2575_s19 = smov %s2578_s22  ;;  %s2576_s20 = smov %s2582_s23 }
 0x278   :  { %13 = sbr.rel (!%p11_p0) target bundleno = 4 (0x4), region = 120 }

// kernel: _lambda_.5
= control target key start
LH: loop header
LB: loop body
LE: loop exit
PB: predicated region body
PF: predicated region fallthrough
CT: control target
= control target key end

     0   :  { %s1577_s12 = smov 0   ;;  %s1579_s13 = smov 0   ;;  %s1862_s0 = inlined_call_operand.vmem [shape: bf16[512,512], index: 0, kind: input, shape index: {}]   ;;  %s1863_s1 = inlined_call_operand.vmem [shape: bf16[512,128], index: 1, kind: input, shape index: {}]   ;;  %s1864_s2 = inlined_call_operand.vmem [shape: f32[1,128], index: 2, kind: input, shape index: {}]   ;;  %s1865_s3 = inlined_call_operand.vmem [shape: f32[512,128], index: 3, kind: output, shape index: {}]  }
   0x1   :  { %s1581_s14 = smov 0   ;;  %s1583_s15 = smov 0  }
   0x2   :  { %s1585_s16 = smov 0   ;;  %s1587_s17 = smov 0  }
   0x3   :  { %s1589_s18 = smov 0  }
   0x4 LB: > { %s22_s19 = sadd.s32 1, %s1546_s16  ;;  %s25_s20 = sadd.s32 1, %s1550_s17  ;;  %s1554_s18 = sphi %s1589_s18, %s13_s18   ;;  %s1550_s17 = sphi %s1587_s17, %s1871_s17   ;;  %s1546_s16 = sphi %s1585_s16, %s1870_s16   ;;  %s1542_s15 = sphi %s1583_s15, %s1869_s15   ;;  %s1538_s14 = sphi %s1581_s14, %s1868_s14   ;;  %s1534_s13 = sphi %s1579_s13, %s1867_s13   ;;  %s1530_s12 = sphi %s1577_s12, %s1866_s12  }
   0x5   : > { %p23_p0 = scmp.ge.s32.totalorder %s22_s19, 2  ;;  %p41_p1 = scmp.ne.s32.totalorder %s1534_s13, %s1530_s12 }
   0x6   : > { %p42_p2 = scmp.eq.s32.totalorder %s1554_s18, 0  ;;  %s34_s24 = sadd.s32 1, %s1534_s13 }
   0x7   : > { %s1873_s19 = smov (%p23_p0, %s22_s19), 0  ;;  %s1875_s20 = smov (!%p23_p0, %s25_s20), %s1550_s17 }
   0x8   : > { %p43_p3 = por %p42_p2, %p41_p1  ;;  %p27_p4 = scmp.ge.s32.totalorder %s1875_s20, 2 }
   0x9   : > { %s30_s21 = ssub.s32 %s1546_s16, %s1873_s19  ;;  %p1185_p6 = scmp.ge.s32.totalorder %s1554_s18, 4 }
   0xa   : > { %s1877_s20 = smov (%p27_p4, %s1875_s20), 0 }
   0xb   : > { %s29_s22 = ssub.s32 %s1550_s17, %s1877_s20  ;;  %143 = sbr.rel (%p1185_p6) target bundleno = 41 (0x29), region = 20 }
   0xc   : > { %s31_s23 = sor.u32 %s30_s21, %s29_s22 }
   0xd   : > { %p32_p5 = scmp.eq.s32.totalorder %s31_s23, 0 }
   0xf   : > { %s1628_s25 = scalar_select %p32_p5, %s1534_s13, %s34_s24  }
  0x12   : > { %146 = sbr.rel (!%p43_p3) target bundleno = 41 (0x29), region = 24  ;;  %s148_s26 = sand.u32 (%p43_p3), 1, %s1534_s13  }
  0x13   : > { %s1188_s27 = sshll.u32 (%p43_p3), %s1546_s16, 1  ;;  %s1186_s28 = sshll.u32 (%p43_p3), %s148_s26, 8 }
  0x14   : > { %s1250_s29 = sshll.u32 (%p43_p3), %s1550_s17, 7  ;;  %s1642_s8 = scalar_lea.vmem (%p43_p3), [#allocation3], %s1186_s28 }
  0x15   : > { %s154_s30 = sadd.s32 (%p43_p3), %s1250_s29, %s1188_s27 }
  0x16   : > { %s1190_s4 = sshll.u32 (%p43_p3), %s154_s30, 2 }
  0x17   : > { %s1637_s7 = scalar_lea.vmem (%p43_p3), %s1862_s0, %s1190_s4 }
  0x18   : > { %v246_v0 = vld [vmem:[%s1637_s7] sm:$0xff] (%p43_p3)  ;;  %v248_v1 = vld [vmem:[%s1637_s7 + $0x10] sm:$0xff] (%p43_p3) }
  0x19   : > { %v250_v2 = vld [vmem:[%s1637_s7 + $0x20] sm:$0xff]  ;;  %247 = vst [vmem:[%s1642_s8] sm:$0xff] %v246_v0  ;;  %249 = vst [vmem:[%s1642_s8 + $0x8] sm:$0xff] %v248_v1  ;;  %v252_v3 = vld [vmem:[%s1637_s7 + $0x30] sm:$0xff] }
  0x1a   : > { %251 = vst [vmem:[%s1642_s8 + $0x10] sm:$0xff] %v250_v2  ;;  %v254_v4 = vld [vmem:[%s1637_s7 + $0x40] sm:$0xff]  ;;  %v256_v5 = vld [vmem:[%s1637_s7 + $0x50] sm:$0xff]  ;;  %253 = vst [vmem:[%s1642_s8 + $0x18] sm:$0xff] %v252_v3 }
  0x1b   : > { %255 = vst [vmem:[%s1642_s8 + $0x20] sm:$0xff] %v254_v4  ;;  %257 = vst [vmem:[%s1642_s8 + $0x28] sm:$0xff] %v256_v5  ;;  %v258_v6 = vld [vmem:[%s1637_s7 + $0x60] sm:$0xff]  ;;  %v260_v7 = vld [vmem:[%s1637_s7 + $0x70] sm:$0xff] }
  0x1c   : > { %v262_v8 = vld [vmem:[%s1637_s7 + $0x80] sm:$0xff]  ;;  %259 = vst [vmem:[%s1642_s8 + $0x30] sm:$0xff] %v258_v6  ;;  %261 = vst [vmem:[%s1642_s8 + $0x38] sm:$0xff] %v260_v7  ;;  %v264_v9 = vld [vmem:[%s1637_s7 + $0x90] sm:$0xff] }
  0x1d   : > { %263 = vst [vmem:[%s1642_s8 + $0x40] sm:$0xff] %v262_v8  ;;  %v266_v10 = vld [vmem:[%s1637_s7 + $0xa0] sm:$0xff]  ;;  %v268_v11 = vld [vmem:[%s1637_s7 + $0xb0] sm:$0xff]  ;;  %265 = vst [vmem:[%s1642_s8 + $0x48] sm:$0xff] %v264_v9 }
  0x1e   : > { %267 = vst [vmem:[%s1642_s8 + $0x50] sm:$0xff] %v266_v10  ;;  %269 = vst [vmem:[%s1642_s8 + $0x58] sm:$0xff] %v268_v11  ;;  %v270_v12 = vld [vmem:[%s1637_s7 + $0xc0] sm:$0xff]  ;;  %v272_v13 = vld [vmem:[%s1637_s7 + $0xd0] sm:$0xff] }
  0x1f   : > { %v274_v14 = vld [vmem:[%s1637_s7 + $0xe0] sm:$0xff]  ;;  %271 = vst [vmem:[%s1642_s8 + $0x60] sm:$0xff] %v270_v12  ;;  %273 = vst [vmem:[%s1642_s8 + $0x68] sm:$0xff] %v272_v13  ;;  %v276_v15 = vld [vmem:[%s1637_s7 + $0xf0] sm:$0xff] }
  0x20   : > { %275 = vst [vmem:[%s1642_s8 + $0x70] sm:$0xff] %v274_v14  ;;  %v278_v16 = vld [vmem:[%s1637_s7 + $0x100] sm:$0xff]  ;;  %v280_v17 = vld [vmem:[%s1637_s7 + $0x110] sm:$0xff]  ;;  %277 = vst [vmem:[%s1642_s8 + $0x78] sm:$0xff] %v276_v15 }
  0x21   : > { %279 = vst [vmem:[%s1642_s8 + $0x80] sm:$0xff] %v278_v16  ;;  %281 = vst [vmem:[%s1642_s8 + $0x88] sm:$0xff] %v280_v17  ;;  %v282_v18 = vld [vmem:[%s1637_s7 + $0x120] sm:$0xff]  ;;  %v284_v19 = vld [vmem:[%s1637_s7 + $0x130] sm:$0xff] }
  0x22   : > { %v286_v20 = vld [vmem:[%s1637_s7 + $0x140] sm:$0xff]  ;;  %283 = vst [vmem:[%s1642_s8 + $0x90] sm:$0xff] %v282_v18  ;;  %285 = vst [vmem:[%s1642_s8 + $0x98] sm:$0xff] %v284_v19  ;;  %v288_v21 = vld [vmem:[%s1637_s7 + $0x150] sm:$0xff] }
  0x23   : > { %287 = vst [vmem:[%s1642_s8 + $0xa0] sm:$0xff] %v286_v20  ;;  %v290_v22 = vld [vmem:[%s1637_s7 + $0x160] sm:$0xff]  ;;  %v292_v23 = vld [vmem:[%s1637_s7 + $0x170] sm:$0xff]  ;;  %289 = vst [vmem:[%s1642_s8 + $0xa8] sm:$0xff] %v288_v21 }
  0x24   : > { %291 = vst [vmem:[%s1642_s8 + $0xb0] sm:$0xff] %v290_v22  ;;  %293 = vst [vmem:[%s1642_s8 + $0xb8] sm:$0xff] %v292_v23  ;;  %v294_v24 = vld [vmem:[%s1637_s7 + $0x180] sm:$0xff]  ;;  %v296_v25 = vld [vmem:[%s1637_s7 + $0x190] sm:$0xff] }
  0x25   : > { %v298_v26 = vld [vmem:[%s1637_s7 + $0x1a0] sm:$0xff]  ;;  %295 = vst [vmem:[%s1642_s8 + $0xc0] sm:$0xff] %v294_v24  ;;  %297 = vst [vmem:[%s1642_s8 + $0xc8] sm:$0xff] %v296_v25  ;;  %v300_v27 = vld [vmem:[%s1637_s7 + $0x1b0] sm:$0xff] }
  0x26   : > { %299 = vst [vmem:[%s1642_s8 + $0xd0] sm:$0xff] %v298_v26  ;;  %v302_v28 = vld [vmem:[%s1637_s7 + $0x1c0] sm:$0xff]  ;;  %v304_v29 = vld [vmem:[%s1637_s7 + $0x1d0] sm:$0xff]  ;;  %301 = vst [vmem:[%s1642_s8 + $0xd8] sm:$0xff] %v300_v27 }
  0x27   : > { %303 = vst [vmem:[%s1642_s8 + $0xe0] sm:$0xff] %v302_v28  ;;  %305 = vst [vmem:[%s1642_s8 + $0xe8] sm:$0xff] %v304_v29  ;;  %v306_v30 = vld [vmem:[%s1637_s7 + $0x1e0] sm:$0xff]  ;;  %v308_v31 = vld [vmem:[%s1637_s7 + $0x1f0] sm:$0xff] }
  0x28   : > { %307 = vst [vmem:[%s1642_s8 + $0xf0] sm:$0xff] %v306_v30  ;;  %309 = vst [vmem:[%s1642_s8 + $0xf8] sm:$0xff] %v308_v31 }
  0x29 PF: > { %p1191_p7 = scmp.ge.s32.totalorder %s1554_s18, 1  ;;  %p323_p8 = scmp.lt.s32.totalorder %s1554_s18, 5 }
  0x2b   : > { %p324_p9 = pnand %p1191_p7, %p323_p8 }
  0x2c   : > { %s330_s9 = sand.u32 (!%p324_p9), 1, %s1530_s12   ;;  %s1193_s10 = sshll.u32 (!%p324_p9), %s1538_s14, 5 }
  0x2d   : > { %327 = sbr.rel (%p324_p9) target bundleno = 390 (0x186), region = 66  ;;  %s1192_s11 = sshll.u32 (!%p324_p9), %s330_s9, 8 }
  0x2e   : > { %p361_p10 = scmp.lt.s32.totalorder (!%p324_p9), %s1193_s10, 63  ;;  %s1195_s21 = sshll.u32 (!%p324_p9), %s1542_s15, 5 }
  0x2f   : > { %p367_p11 = scmp.lt.s32.totalorder (!%p324_p9), %s1195_s21, 63  ;;  %s1720_s12 = scalar_lea.vmem (!%p324_p9), [#allocation3], %s1192_s11 }
  0x30   : > { %p1197_p12 = scmp.ne.s32.totalorder (!%p324_p9), %s1538_s14, 0 }
  0x34   : > { %s1879_s10 = smov (!%p361_p10, %s1193_s10), 63  ;;  %s1881_s21 = smov (!%p367_p11, %s1195_s21), 63 }
  0x35   : > { %s1194_s22 = sshll.u32 %s1879_s10, 2  ;;  %s1196_s27 = sshll.u32 %s1881_s21, 3  ;;  %v1556_v32 = vmov (!%p1197_p12), 0.0  }
  0x36   : > { %s1713_s26 = scalar_lea.vmem %s1863_s1, %s1194_s22  ;;  %s1718_s30 = scalar_lea.vmem %s1865_s3, %s1196_s27  ;;  %377 = vst [vmem:[#allocation2] sm:$0xff] (!%p1197_p12), %v1556_v32  ;;  %378 = vst [vmem:[#allocation2 + $0x8] sm:$0xff] (!%p1197_p12), %v1556_v32 }
  0x37   : > { %376 = sbr.rel (%p1197_p12) target bundleno = 70 (0x46), region = 74  ;;  %379 = vst [vmem:[#allocation2 + $0x10] sm:$0xff] (!%p1197_p12), %v1556_v32  ;;  %380 = vst [vmem:[#allocation2 + $0x18] sm:$0xff] (!%p1197_p12), %v1556_v32 }
  0x38   : > { %381 = vst [vmem:[#allocation2 + $0x20] sm:$0xff] (!%p1197_p12), %v1556_v32  ;;  %382 = vst [vmem:[#allocation2 + $0x28] sm:$0xff] (!%p1197_p12), %v1556_v32 }
  0x39   : > { %383 = vst [vmem:[#allocation2 + $0x30] sm:$0xff] (!%p1197_p12), %v1556_v32  ;;  %384 = vst [vmem:[#allocation2 + $0x38] sm:$0xff] (!%p1197_p12), %v1556_v32 }
  0x3a   : > { %385 = vst [vmem:[#allocation2 + $0x40] sm:$0xff] (!%p1197_p12), %v1556_v32  ;;  %386 = vst [vmem:[#allocation2 + $0x48] sm:$0xff] (!%p1197_p12), %v1556_v32 }
  0x3b   : > { %387 = vst [vmem:[#allocation2 + $0x50] sm:$0xff] (!%p1197_p12), %v1556_v32  ;;  %388 = vst [vmem:[#allocation2 + $0x58] sm:$0xff] (!%p1197_p12), %v1556_v32 }
  0x3c   : > { %389 = vst [vmem:[#allocation2 + $0x60] sm:$0xff] (!%p1197_p12), %v1556_v32  ;;  %390 = vst [vmem:[#allocation2 + $0x68] sm:$0xff] (!%p1197_p12), %v1556_v32 }
  0x3d   : > { %391 = vst [vmem:[#allocation2 + $0x70] sm:$0xff] (!%p1197_p12), %v1556_v32  ;;  %392 = vst [vmem:[#allocation2 + $0x78] sm:$0xff] (!%p1197_p12), %v1556_v32 }
  0x3e   : > { %393 = vst [vmem:[#allocation2 + $0x80] sm:$0xff] %v1556_v32  ;;  %394 = vst [vmem:[#allocation2 + $0x88] sm:$0xff] %v1556_v32 }
  0x3f   : > { %395 = vst [vmem:[#allocation2 + $0x90] sm:$0xff] %v1556_v32  ;;  %396 = vst [vmem:[#allocation2 + $0x98] sm:$0xff] %v1556_v32 }
  0x40   : > { %397 = vst [vmem:[#allocation2 + $0xa0] sm:$0xff] %v1556_v32  ;;  %398 = vst [vmem:[#allocation2 + $0xa8] sm:$0xff] %v1556_v32 }
  0x41   : > { %399 = vst [vmem:[#allocation2 + $0xb0] sm:$0xff] %v1556_v32  ;;  %400 = vst [vmem:[#allocation2 + $0xb8] sm:$0xff] %v1556_v32 }
  0x42   : > { %401 = vst [vmem:[#allocation2 + $0xc0] sm:$0xff] %v1556_v32  ;;  %402 = vst [vmem:[#allocation2 + $0xc8] sm:$0xff] %v1556_v32 }
  0x43   : > { %403 = vst [vmem:[#allocation2 + $0xd0] sm:$0xff] %v1556_v32  ;;  %404 = vst [vmem:[#allocation2 + $0xd8] sm:$0xff] %v1556_v32 }
  0x44   : > { %405 = vst [vmem:[#allocation2 + $0xe0] sm:$0xff] %v1556_v32  ;;  %406 = vst [vmem:[#allocation2 + $0xe8] sm:$0xff] %v1556_v32 }
  0x45   : > { %407 = vst [vmem:[#allocation2 + $0xf0] sm:$0xff] %v1556_v32  ;;  %408 = vst [vmem:[#allocation2 + $0xf8] sm:$0xff] %v1556_v32 }
  0x46 PF: > { %v1436_v33 = vld [vmem:[%s1713_s26 + $0x40] sm:$0xff]   ;;  %v1438_v35 = vld [vmem:[%s1713_s26 + $0x48] sm:$0xff]   ;;  %v1440_v37 = vld [vmem:[%s1713_s26 + $0x50] sm:$0xff]   ;;  %p1246_p13 = scmp.ne.s32.totalorder %s1538_s14, 1 }
  0x47   : > { %v1437_v34 = vld [vmem:[%s1713_s26] sm:$0xff]   ;;  %1251 = vmatprep.subr.bf16.mxu0 %v1436_v33  ;;  %1363 = vmatprep.subr.bf16.mxu1 %v1436_v33  ;;  %v1439_v36 = vld [vmem:[%s1713_s26 + $0x8] sm:$0xff]   ;;  %v1441_v38 = vld [vmem:[%s1713_s26 + $0x10] sm:$0xff]  }
  0x48   : > { %1252 = vmatpush3.bf16.msra.mxu0 %v1437_v34  ;;  %1371 = vmatpush3.bf16.msra.mxu1 %v1437_v34  ;;  %v1442_v39 = vld [vmem:[%s1713_s26 + $0x58] sm:$0xff]   ;;  %v1444_v41 = vld [vmem:[%s1713_s26 + $0x60] sm:$0xff]   ;;  %v1446_v43 = vld [vmem:[%s1713_s26 + $0x68] sm:$0xff]  }
  0x49   : > { %1253 = vmatprep.subr.bf16.mxu0 %v1438_v35  ;;  %1364 = vmatprep.subr.bf16.mxu1 %v1438_v35  ;;  %v1443_v40 = vld [vmem:[%s1713_s26 + $0x18] sm:$0xff]   ;;  %v1445_v42 = vld [vmem:[%s1713_s26 + $0x20] sm:$0xff]   ;;  %v1447_v46 = vld [vmem:[%s1713_s26 + $0x28] sm:$0xff]  }
  0x4a   : > { %v1454_v44 = vld [vmem:[%s1720_s12 + $0x4] ss:$8 sps:$4 sm:$0xff]   ;;  %v1448_v47 = vld [vmem:[%s1713_s26 + $0x70] sm:$0xff]   ;;  %v1450_v49 = vld [vmem:[%s1713_s26 + $0x78] sm:$0xff]  }
  0x4b   : > { %v1457_v45 = vld [vmem:[%s1720_s12 + $0x84] ss:$8 sps:$4 sm:$0xff]   ;;  %793 = vmatprep.mubr.bf16.mxu0 %v1454_v44  ;;  %v1449_v48 = vld [vmem:[%s1713_s26 + $0x30] sm:$0xff]   ;;  %v1451_v50 = vld [vmem:[%s1713_s26 + $0x38] sm:$0xff]  }
  0x4c   : > { %1254 = vmatpush3.bf16.msra.mxu0 %v1439_v36  ;;  %1372 = vmatpush3.bf16.msra.mxu1 %v1439_v36  ;;  %v1452_v51 = vld [vmem:[%s1720_s12] ss:$8 sps:$4 sm:$0xff]   ;;  %v1458_v53 = vld [vmem:[%s1720_s12 + $0x14] ss:$8 sps:$4 sm:$0xff]   ;;  %v1462_v55 = vld [vmem:[%s1720_s12 + $0x10] ss:$8 sps:$4 sm:$0xff]  }
  0x4d   : > { %1255 = vmatprep.subr.bf16.mxu0 %v1440_v37  ;;  %1365 = vmatprep.subr.bf16.mxu1 %v1440_v37  ;;  %v1455_v52 = vld [vmem:[%s1720_s12 + $0x80] ss:$8 sps:$4 sm:$0xff]   ;;  %v1460_v54 = vld [vmem:[%s1720_s12 + $0x94] ss:$8 sps:$4 sm:$0xff]   ;;  %v1463_v56 = vld [vmem:[%s1720_s12 + $0x90] ss:$8 sps:$4 sm:$0xff]  }
  0x4e   : > { %857 = vmatprep.mubr.bf16.mxu1 %v1457_v45  ;;  %v1464_v57 = vld [vmem:[%s1720_s12 + $0x24] ss:$8 sps:$4 sm:$0xff]   ;;  %v1468_v59 = vld [vmem:[%s1720_s12 + $0x20] ss:$8 sps:$4 sm:$0xff]   ;;  %v1470_v61 = vld [vmem:[%s1720_s12 + $0x34] ss:$8 sps:$4 sm:$0xff]  }
  0x4f   : > { %v1466_v58 = vld [vmem:[%s1720_s12 + $0xa4] ss:$8 sps:$4 sm:$0xff]   ;;  %v1469_v60 = vld [vmem:[%s1720_s12 + $0xa0] ss:$8 sps:$4 sm:$0xff]   ;;  %v1472_v62 = vld [vmem:[%s1720_s12 + $0xb4] ss:$8 sps:$4 sm:$0xff]  }
  0x50   : > { %1256 = vmatpush3.bf16.msra.mxu0 %v1441_v38  ;;  %1373 = vmatpush3.bf16.msra.mxu1 %v1441_v38  ;;  %v1474_v63 = vld [vmem:[%s1720_s12 + $0x30] ss:$8 sps:$4 sm:$0xff]   ;;  %v1476_v1 = vld [vmem:[%s1720_s12 + $0x44] ss:$8 sps:$4 sm:$0xff]   ;;  %v1480_v3 = vld [vmem:[%s1720_s12 + $0x40] ss:$8 sps:$4 sm:$0xff]  }
  0x51   : > { %1257 = vmatprep.subr.bf16.mxu0 %v1442_v39  ;;  %1366 = vmatprep.subr.bf16.mxu1 %v1442_v39  ;;  %v1475_v0 = vld [vmem:[%s1720_s12 + $0xb0] ss:$8 sps:$4 sm:$0xff]   ;;  %v1478_v2 = vld [vmem:[%s1720_s12 + $0xc4] ss:$8 sps:$4 sm:$0xff]   ;;  %v1481_v4 = vld [vmem:[%s1720_s12 + $0xc0] ss:$8 sps:$4 sm:$0xff]  }
  0x52   : > { %v1482_v5 = vld [vmem:[%s1720_s12 + $0x54] ss:$8 sps:$4 sm:$0xff]   ;;  %v1486_v7 = vld [vmem:[%s1720_s12 + $0x50] ss:$8 sps:$4 sm:$0xff]   ;;  %v1488_v9 = vld [vmem:[%s1720_s12 + $0x64] ss:$8 sps:$4 sm:$0xff]  }
  0x53   : > { %v1484_v6 = vld [vmem:[%s1720_s12 + $0xd4] ss:$8 sps:$4 sm:$0xff]   ;;  %v1487_v8 = vld [vmem:[%s1720_s12 + $0xd0] ss:$8 sps:$4 sm:$0xff]   ;;  %v1490_v10 = vld [vmem:[%s1720_s12 + $0xe4] ss:$8 sps:$4 sm:$0xff]  }
  0x54   : > { %1258 = vmatpush3.bf16.msra.mxu0 %v1443_v40  ;;  %1374 = vmatpush3.bf16.msra.mxu1 %v1443_v40  ;;  %v1492_v11 = vld [vmem:[%s1720_s12 + $0x60] ss:$8 sps:$4 sm:$0xff]   ;;  %v1494_v13 = vld [vmem:[%s1720_s12 + $0x74] ss:$8 sps:$4 sm:$0xff]   ;;  %v1498_v15 = vld [vmem:[%s1720_s12 + $0x70] ss:$8 sps:$4 sm:$0xff]  }
  0x55   : > { %1259 = vmatprep.subr.bf16.mxu0 %v1444_v41  ;;  %1367 = vmatprep.subr.bf16.mxu1 %v1444_v41  ;;  %v1493_v12 = vld [vmem:[%s1720_s12 + $0xe0] ss:$8 sps:$4 sm:$0xff]   ;;  %v1496_v14 = vld [vmem:[%s1720_s12 + $0xf4] ss:$8 sps:$4 sm:$0xff]   ;;  %v1499_v16 = vld [vmem:[%s1720_s12 + $0xf0] ss:$8 sps:$4 sm:$0xff]  }
  0x56   : > { %v409_v19 = vld [vmem:[#allocation2] sm:$0xff]  ;;  %v410_v27 = vld [vmem:[#allocation2 + $0x8] sm:$0xff]  ;;  %v411_v39 = vld [vmem:[#allocation2 + $0x10] sm:$0xff] }
  0x57   : > { %v425_v21 = vld [vmem:[#allocation2 + $0x80] sm:$0xff]  ;;  %v426_v29 = vld [vmem:[#allocation2 + $0x88] sm:$0xff]  ;;  %v427_v41 = vld [vmem:[#allocation2 + $0x90] sm:$0xff] }
  0x58   : > { %1260 = vmatpush3.bf16.msra.mxu0 %v1445_v42  ;;  %1375 = vmatpush3.bf16.msra.mxu1 %v1445_v42 }
  0x59   : > { %1261 = vmatprep.subr.bf16.mxu0 %v1446_v43  ;;  %1368 = vmatprep.subr.bf16.mxu1 %v1446_v43 }
  0x5c   : > { %1262 = vmatpush3.bf16.msra.mxu0 %v1447_v46  ;;  %1376 = vmatpush3.bf16.msra.mxu1 %v1447_v46 }
  0x5d   : > { %1263 = vmatprep.subr.bf16.mxu0 %v1448_v47  ;;  %1369 = vmatprep.subr.bf16.mxu1 %v1448_v47  ;;  %v412_v47 = vld [vmem:[#allocation2 + $0x18] sm:$0xff] }
  0x60   : > { %1264 = vmatpush3.bf16.msra.mxu0 %v1449_v48  ;;  %1377 = vmatpush3.bf16.msra.mxu1 %v1449_v48 }
  0x61   : > { %1265 = vmatprep.subr.bf16.mxu0 %v1450_v49  ;;  %1370 = vmatprep.subr.bf16.mxu1 %v1450_v49  ;;  %v428_v49 = vld [vmem:[#allocation2 + $0x98] sm:$0xff] }
  0x64   : > { %1266 = vmatpush3.bf16.msra.mxu0 %v1451_v50  ;;  %1378 = vmatpush3.bf16.msra.mxu1 %v1451_v50 }
  0x67   : > { %794 = vmatmul.mubr.bf16.vlgmr.msra.gmra.mrb[0].mxu0 %v1452_v51  ;;  %858 = vmatmul.mubr.bf16.vlgmr.msra.gmra.mrb[0].mxu1 %v1455_v52 }
  0x68   : > { %801 = vmatprep.mubr.bf16.mxu0 %v1458_v53  ;;  %865 = vmatprep.mubr.bf16.mxu1 %v1460_v54 }
  0x6f   : > { %802 = vmatmul.mubr.bf16.gmra.mrb[4].mxu0 %v1462_v55  ;;  %866 = vmatmul.mubr.bf16.gmra.mrb[4].mxu1 %v1463_v56 }
  0x70   : > { %809 = vmatprep.mubr.bf16.mxu0 %v1464_v57  ;;  %873 = vmatprep.mubr.bf16.mxu1 %v1466_v58 }
  0x77   : > { %810 = vmatmul.mubr.bf16.gmra.mrb[8].mxu0 %v1468_v59  ;;  %874 = vmatmul.mubr.bf16.gmra.mrb[8].mxu1 %v1469_v60  ;;  %v413_v59 = vld [vmem:[#allocation2 + $0x20] sm:$0xff] }
  0x78   : > { %817 = vmatprep.mubr.bf16.mxu0 %v1470_v61  ;;  %881 = vmatprep.mubr.bf16.mxu1 %v1472_v62  ;;  %v429_v61 = vld [vmem:[#allocation2 + $0xa0] sm:$0xff] }
  0x7f   : > { %818 = vmatmul.mubr.bf16.gmra.mrb[12].mxu0 %v1474_v63  ;;  %882 = vmatmul.mubr.bf16.gmra.mrb[12].mxu1 %v1475_v0 }
  0x80   : > { %825 = vmatprep.mubr.bf16.mxu0 %v1476_v1  ;;  %889 = vmatprep.mubr.bf16.mxu1 %v1478_v2 }
  0x87   : > { %826 = vmatmul.mubr.bf16.gmra.mrb[16].mxu0 %v1480_v3  ;;  %890 = vmatmul.mubr.bf16.gmra.mrb[16].mxu1 %v1481_v4  ;;  %v414_v3 = vld [vmem:[#allocation2 + $0x28] sm:$0xff] }
  0x88   : > { %833 = vmatprep.mubr.bf16.mxu0 %v1482_v5  ;;  %897 = vmatprep.mubr.bf16.mxu1 %v1484_v6  ;;  %v430_v5 = vld [vmem:[#allocation2 + $0xa8] sm:$0xff] }
  0x8f   : > { %834 = vmatmul.mubr.bf16.gmra.mrb[20].mxu0 %v1486_v7  ;;  %898 = vmatmul.mubr.bf16.gmra.mrb[20].mxu1 %v1487_v8 }
  0x90   : > { %841 = vmatprep.mubr.bf16.mxu0 %v1488_v9  ;;  %905 = vmatprep.mubr.bf16.mxu1 %v1490_v10 }
  0x97   : > { %842 = vmatmul.mubr.bf16.gmra.mrb[24].mxu0 %v1492_v11  ;;  %906 = vmatmul.mubr.bf16.gmra.mrb[24].mxu1 %v1493_v12 }
  0x98   : > { %849 = vmatprep.mubr.bf16.mxu0 %v1494_v13  ;;  %913 = vmatprep.mubr.bf16.mxu1 %v1496_v14 }
  0x9f   : > { %850 = vmatmul.mubr.bf16.gmra.mrb[28].mxu0 %v1498_v15  ;;  %914 = vmatmul.mubr.bf16.gmra.mrb[28].mxu1 %v1499_v16  ;;  %v415_v15 = vld [vmem:[#allocation2 + $0x30] sm:$0xff] }
 0x13a   : > { %v1267_v17 = vpop.f32.mrb[0].mxu0  ;;  %v1315_v18 = vpop.f32.mrb[0].mxu1 }
 0x13b   : > { %v1268_v20 = vpop.f32.mrb[1].mxu0  ;;  %v1316_v22 = vpop.f32.mrb[1].mxu1 }
 0x13c   : > { %v1269_v23 = vadd.f32 %v1268_v20, %v1267_v17  ;;  %v1317_v24 = vadd.f32 %v1316_v22, %v1315_v18  ;;  %v1270_v25 = vpop.f32.mrb[2].mxu0  ;;  %v1318_v26 = vpop.f32.mrb[2].mxu1  ;;  %v431_v17 = vld [vmem:[#allocation2 + $0xb0] sm:$0xff] }
 0x13d   : > { %v1271_v28 = vpop.f32.mrb[3].mxu0  ;;  %v1319_v30 = vpop.f32.mrb[3].mxu1 }
 0x13e   : > { %v922_v31 = vadd.f32 %v1269_v23, %v409_v19  ;;  %v938_v32 = vadd.f32 %v1317_v24, %v425_v21  ;;  %v1272_v33 = vadd.f32 %v1271_v28, %v1270_v25  ;;  %v1320_v34 = vadd.f32 %v1319_v30, %v1318_v26  ;;  %v416_v23 = vld [vmem:[#allocation2 + $0x38] sm:$0xff] }
 0x13f   : > { %v432_v25 = vld [vmem:[#allocation2 + $0xb8] sm:$0xff] }
 0x140   : > { %954 = vst [vmem:[#allocation2] sm:$0xff] %v922_v31  ;;  %970 = vst [vmem:[#allocation2 + $0x80] sm:$0xff] %v938_v32  ;;  %v923_v35 = vadd.f32 %v1272_v33, %v410_v27  ;;  %v939_v36 = vadd.f32 %v1320_v34, %v426_v29 }
 0x142   : > { %955 = vst [vmem:[#allocation2 + $0x8] sm:$0xff] %v923_v35  ;;  %971 = vst [vmem:[#allocation2 + $0x88] sm:$0xff] %v939_v36  ;;  %v1273_v37 = vpop.f32.mrb[4].mxu0  ;;  %v1321_v38 = vpop.f32.mrb[4].mxu1  ;;  %v417_v35 = vld [vmem:[#allocation2 + $0x40] sm:$0xff] }
 0x143   : > { %v1274_v40 = vpop.f32.mrb[5].mxu0  ;;  %v1322_v42 = vpop.f32.mrb[5].mxu1 }
 0x144   : > { %v1275_v43 = vadd.f32 %v1274_v40, %v1273_v37  ;;  %v1323_v44 = vadd.f32 %v1322_v42, %v1321_v38  ;;  %v1276_v45 = vpop.f32.mrb[6].mxu0  ;;  %v1324_v46 = vpop.f32.mrb[6].mxu1  ;;  %v433_v37 = vld [vmem:[#allocation2 + $0xc0] sm:$0xff] }
 0x145   : > { %v1277_v48 = vpop.f32.mrb[7].mxu0  ;;  %v1325_v50 = vpop.f32.mrb[7].mxu1 }
 0x146   : > { %v924_v51 = vadd.f32 %v1275_v43, %v411_v39  ;;  %v940_v52 = vadd.f32 %v1323_v44, %v427_v41  ;;  %v1278_v53 = vadd.f32 %v1277_v48, %v1276_v45  ;;  %v1326_v54 = vadd.f32 %v1325_v50, %v1324_v46  ;;  %v418_v43 = vld [vmem:[#allocation2 + $0x48] sm:$0xff] }
 0x147   : > { %v434_v45 = vld [vmem:[#allocation2 + $0xc8] sm:$0xff] }
 0x148   : > { %956 = vst [vmem:[#allocation2 + $0x10] sm:$0xff] %v924_v51  ;;  %972 = vst [vmem:[#allocation2 + $0x90] sm:$0xff] %v940_v52  ;;  %v925_v55 = vadd.f32 %v1278_v53, %v412_v47  ;;  %v941_v56 = vadd.f32 %v1326_v54, %v428_v49 }
 0x14a   : > { %957 = vst [vmem:[#allocation2 + $0x18] sm:$0xff] %v925_v55  ;;  %973 = vst [vmem:[#allocation2 + $0x98] sm:$0xff] %v941_v56  ;;  %v1279_v57 = vpop.f32.mrb[8].mxu0  ;;  %v1327_v58 = vpop.f32.mrb[8].mxu1  ;;  %v419_v55 = vld [vmem:[#allocation2 + $0x50] sm:$0xff] }
 0x14b   : > { %v1280_v60 = vpop.f32.mrb[9].mxu0  ;;  %v1328_v62 = vpop.f32.mrb[9].mxu1 }
 0x14c   : > { %v1281_v63 = vadd.f32 %v1280_v60, %v1279_v57  ;;  %v1329_v0 = vadd.f32 %v1328_v62, %v1327_v58  ;;  %v1282_v1 = vpop.f32.mrb[10].mxu0  ;;  %v1330_v2 = vpop.f32.mrb[10].mxu1  ;;  %v435_v57 = vld [vmem:[#allocation2 + $0xd0] sm:$0xff] }
 0x14d   : > { %v1283_v4 = vpop.f32.mrb[11].mxu0  ;;  %v1331_v6 = vpop.f32.mrb[11].mxu1 }
 0x14e   : > { %v926_v7 = vadd.f32 %v1281_v63, %v413_v59  ;;  %v942_v8 = vadd.f32 %v1329_v0, %v429_v61  ;;  %v1284_v9 = vadd.f32 %v1283_v4, %v1282_v1  ;;  %v1332_v10 = vadd.f32 %v1331_v6, %v1330_v2  ;;  %v420_v63 = vld [vmem:[#allocation2 + $0x58] sm:$0xff] }
 0x14f   : > { %v436_v1 = vld [vmem:[#allocation2 + $0xd8] sm:$0xff] }
 0x150   : > { %958 = vst [vmem:[#allocation2 + $0x20] sm:$0xff] %v926_v7  ;;  %974 = vst [vmem:[#allocation2 + $0xa0] sm:$0xff] %v942_v8  ;;  %v927_v11 = vadd.f32 %v1284_v9, %v414_v3  ;;  %v943_v12 = vadd.f32 %v1332_v10, %v430_v5 }
 0x152   : > { %959 = vst [vmem:[#allocation2 + $0x28] sm:$0xff] %v927_v11  ;;  %975 = vst [vmem:[#allocation2 + $0xa8] sm:$0xff] %v943_v12  ;;  %v1285_v13 = vpop.f32.mrb[12].mxu0  ;;  %v1333_v14 = vpop.f32.mrb[12].mxu1  ;;  %v421_v11 = vld [vmem:[#allocation2 + $0x60] sm:$0xff] }
 0x153   : > { %v1286_v16 = vpop.f32.mrb[13].mxu0  ;;  %v1334_v18 = vpop.f32.mrb[13].mxu1 }
 0x154   : > { %v1287_v19 = vadd.f32 %v1286_v16, %v1285_v13  ;;  %v1335_v20 = vadd.f32 %v1334_v18, %v1333_v14  ;;  %v1288_v21 = vpop.f32.mrb[14].mxu0  ;;  %v1336_v22 = vpop.f32.mrb[14].mxu1  ;;  %v437_v13 = vld [vmem:[#allocation2 + $0xe0] sm:$0xff] }
 0x155   : > { %v1289_v24 = vpop.f32.mrb[15].mxu0  ;;  %v1337_v26 = vpop.f32.mrb[15].mxu1 }
 0x156   : > { %v928_v27 = vadd.f32 %v1287_v19, %v415_v15  ;;  %v944_v28 = vadd.f32 %v1335_v20, %v431_v17  ;;  %v1290_v29 = vadd.f32 %v1289_v24, %v1288_v21  ;;  %v1338_v30 = vadd.f32 %v1337_v26, %v1336_v22  ;;  %v422_v19 = vld [vmem:[#allocation2 + $0x68] sm:$0xff] }
 0x157   : > { %v438_v21 = vld [vmem:[#allocation2 + $0xe8] sm:$0xff] }
 0x158   : > { %960 = vst [vmem:[#allocation2 + $0x30] sm:$0xff] %v928_v27  ;;  %976 = vst [vmem:[#allocation2 + $0xb0] sm:$0xff] %v944_v28  ;;  %v929_v31 = vadd.f32 %v1290_v29, %v416_v23  ;;  %v945_v32 = vadd.f32 %v1338_v30, %v432_v25 }
 0x15a   : > { %961 = vst [vmem:[#allocation2 + $0x38] sm:$0xff] %v929_v31  ;;  %977 = vst [vmem:[#allocation2 + $0xb8] sm:$0xff] %v945_v32  ;;  %v1291_v33 = vpop.f32.mrb[16].mxu0  ;;  %v1339_v34 = vpop.f32.mrb[16].mxu1  ;;  %v423_v31 = vld [vmem:[#allocation2 + $0x70] sm:$0xff] }
 0x15b   : > { %v1292_v36 = vpop.f32.mrb[17].mxu0  ;;  %v1340_v38 = vpop.f32.mrb[17].mxu1 }
 0x15c   : > { %v1293_v39 = vadd.f32 %v1292_v36, %v1291_v33  ;;  %v1341_v40 = vadd.f32 %v1340_v38, %v1339_v34  ;;  %v1294_v41 = vpop.f32.mrb[18].mxu0  ;;  %v1342_v42 = vpop.f32.mrb[18].mxu1  ;;  %v439_v33 = vld [vmem:[#allocation2 + $0xf0] sm:$0xff] }
 0x15d   : > { %v1295_v44 = vpop.f32.mrb[19].mxu0  ;;  %v1343_v46 = vpop.f32.mrb[19].mxu1 }
 0x15e   : > { %v930_v47 = vadd.f32 %v1293_v39, %v417_v35  ;;  %v946_v48 = vadd.f32 %v1341_v40, %v433_v37  ;;  %v1296_v49 = vadd.f32 %v1295_v44, %v1294_v41  ;;  %v1344_v50 = vadd.f32 %v1343_v46, %v1342_v42  ;;  %v424_v39 = vld [vmem:[#allocation2 + $0x78] sm:$0xff] }
 0x15f   : > { %v440_v41 = vld [vmem:[#allocation2 + $0xf8] sm:$0xff] }
 0x160   : > { %962 = vst [vmem:[#allocation2 + $0x40] sm:$0xff] %v930_v47  ;;  %978 = vst [vmem:[#allocation2 + $0xc0] sm:$0xff] %v946_v48  ;;  %v931_v51 = vadd.f32 %v1296_v49, %v418_v43  ;;  %v947_v52 = vadd.f32 %v1344_v50, %v434_v45  ;;  %v990_v49 = vld [vmem:[#allocation2] sm:$0xff] (!%p1246_p13) }
 0x161   : > { %v1775_v50 = vld [vmem:[%s1864_s2] ss:$0 sm:$0xff] (!%p1246_p13) }
 0x162   : > { %963 = vst [vmem:[#allocation2 + $0x48] sm:$0xff] %v931_v51  ;;  %979 = vst [vmem:[#allocation2 + $0xc8] sm:$0xff] %v947_v52  ;;  %v1297_v53 = vpop.f32.mrb[20].mxu0  ;;  %v1345_v54 = vpop.f32.mrb[20].mxu1  ;;  %v991_v51 = vld [vmem:[#allocation2 + $0x8] sm:$0xff] (!%p1246_p13)  ;;  %v1029_v52 = vadd.f32 (!%p1246_p13), %v1775_v50, %v990_v49 }
 0x163   : > { %v1298_v56 = vpop.f32.mrb[21].mxu0  ;;  %v1346_v58 = vpop.f32.mrb[21].mxu1 }
 0x164   : > { %v1299_v59 = vadd.f32 %v1298_v56, %v1297_v53  ;;  %v1347_v60 = vadd.f32 %v1346_v58, %v1345_v54  ;;  %v1300_v61 = vpop.f32.mrb[22].mxu0  ;;  %v1348_v62 = vpop.f32.mrb[22].mxu1  ;;  %v1030_v53 = vadd.f32 (!%p1246_p13), %v1775_v50, %v991_v51  ;;  %v992_v54 = vld [vmem:[#allocation2 + $0x10] sm:$0xff] (!%p1246_p13)  ;;  %v994_v56 = vld [vmem:[#allocation2 + $0x20] sm:$0xff] (!%p1246_p13)  ;;  %1061 = vst [vmem:[%s1718_s30] sm:$0xff] (!%p1246_p13), %v1029_v52 }
 0x165   : > { %v1301_v0 = vpop.f32.mrb[23].mxu0  ;;  %v1349_v2 = vpop.f32.mrb[23].mxu1 }
 0x166   : > { %v932_v3 = vadd.f32 %v1299_v59, %v419_v55  ;;  %v948_v4 = vadd.f32 %v1347_v60, %v435_v57  ;;  %v1302_v5 = vadd.f32 %v1301_v0, %v1300_v61  ;;  %v1350_v6 = vadd.f32 %v1349_v2, %v1348_v62  ;;  %v993_v55 = vld [vmem:[#allocation2 + $0x18] sm:$0xff] (!%p1246_p13)  ;;  %v995_v60 = vld [vmem:[#allocation2 + $0x28] sm:$0xff] (!%p1246_p13)  ;;  %v996_v61 = vld [vmem:[#allocation2 + $0x30] sm:$0xff] (!%p1246_p13)  ;;  %1062 = vst [vmem:[%s1718_s30 + $0x8] sm:$0xff] (!%p1246_p13), %v1030_v53 }
 0x167   : > { %v1031_v57 = vadd.f32 (!%p1246_p13), %v1775_v50, %v992_v54  ;;  %v1032_v58 = vadd.f32 (!%p1246_p13), %v1775_v50, %v993_v55  ;;  %v1033_v59 = vadd.f32 (!%p1246_p13), %v1775_v50, %v994_v56  ;;  %v997_v62 = vld [vmem:[#allocation2 + $0x38] sm:$0xff] (!%p1246_p13)  ;;  %v1035_v0 = vadd.f32 (!%p1246_p13), %v1775_v50, %v996_v61  ;;  %v998_v2 = vld [vmem:[#allocation2 + $0x40] sm:$0xff] (!%p1246_p13) }
 0x168   : > { %964 = vst [vmem:[#allocation2 + $0x50] sm:$0xff] %v932_v3  ;;  %980 = vst [vmem:[#allocation2 + $0xd0] sm:$0xff] %v948_v4  ;;  %v933_v7 = vadd.f32 %v1302_v5, %v420_v63  ;;  %v949_v8 = vadd.f32 %v1350_v6, %v436_v1  ;;  %v1034_v63 = vadd.f32 (!%p1246_p13), %v1775_v50, %v995_v60 }
 0x169   : > { %v1036_v1 = vadd.f32 (!%p1246_p13), %v1775_v50, %v997_v62  ;;  %v999_v3 = vld [vmem:[#allocation2 + $0x48] sm:$0xff] (!%p1246_p13)  ;;  %1063 = vst [vmem:[%s1718_s30 + $0x10] sm:$0xff] (!%p1246_p13), %v1031_v57  ;;  %1064 = vst [vmem:[%s1718_s30 + $0x18] sm:$0xff] (!%p1246_p13), %v1032_v58  ;;  %v1037_v5 = vadd.f32 (!%p1246_p13), %v1775_v50, %v998_v2 }
 0x16a   : > { %965 = vst [vmem:[#allocation2 + $0x58] sm:$0xff] %v933_v7  ;;  %981 = vst [vmem:[#allocation2 + $0xd8] sm:$0xff] %v949_v8  ;;  %v1303_v9 = vpop.f32.mrb[24].mxu0  ;;  %v1351_v10 = vpop.f32.mrb[24].mxu1  ;;  %v1038_v6 = vadd.f32 (!%p1246_p13), %v1775_v50, %v999_v3 }
 0x16b   : > { %v1304_v12 = vpop.f32.mrb[25].mxu0  ;;  %v1352_v14 = vpop.f32.mrb[25].mxu1  ;;  %1065 = vst [vmem:[%s1718_s30 + $0x20] sm:$0xff] (!%p1246_p13), %v1033_v59  ;;  %1066 = vst [vmem:[%s1718_s30 + $0x28] sm:$0xff] (!%p1246_p13), %v1034_v63 }
 0x16c   : > { %v1305_v15 = vadd.f32 %v1304_v12, %v1303_v9  ;;  %v1353_v16 = vadd.f32 %v1352_v14, %v1351_v10  ;;  %v1306_v17 = vpop.f32.mrb[26].mxu0  ;;  %v1354_v18 = vpop.f32.mrb[26].mxu1  ;;  %1067 = vst [vmem:[%s1718_s30 + $0x30] sm:$0xff] (!%p1246_p13), %v1035_v0  ;;  %1068 = vst [vmem:[%s1718_s30 + $0x38] sm:$0xff] (!%p1246_p13), %v1036_v1 }
 0x16d   : > { %v1307_v20 = vpop.f32.mrb[27].mxu0  ;;  %v1355_v22 = vpop.f32.mrb[27].mxu1  ;;  %1069 = vst [vmem:[%s1718_s30 + $0x40] sm:$0xff] (!%p1246_p13), %v1037_v5  ;;  %1070 = vst [vmem:[%s1718_s30 + $0x48] sm:$0xff] (!%p1246_p13), %v1038_v6 }
 0x16e   : > { %v934_v23 = vadd.f32 %v1305_v15, %v421_v11  ;;  %v950_v24 = vadd.f32 %v1353_v16, %v437_v13  ;;  %v1308_v25 = vadd.f32 %v1307_v20, %v1306_v17  ;;  %v1356_v26 = vadd.f32 %v1355_v22, %v1354_v18  ;;  %v1006_v16 = vld [vmem:[#allocation2 + $0x80] sm:$0xff] (!%p1246_p13)  ;;  %v1007_v20 = vld [vmem:[#allocation2 + $0x88] sm:$0xff] (!%p1246_p13)  ;;  %v1009_v22 = vld [vmem:[#allocation2 + $0x98] sm:$0xff] (!%p1246_p13) }
 0x16f   : > { %v1000_v4 = vld [vmem:[#allocation2 + $0x50] sm:$0xff] (!%p1246_p13) }
 0x170   : > { %966 = vst [vmem:[#allocation2 + $0x60] sm:$0xff] %v934_v23  ;;  %982 = vst [vmem:[#allocation2 + $0xe0] sm:$0xff] %v950_v24  ;;  %v935_v27 = vadd.f32 %v1308_v25, %v422_v19  ;;  %v951_v28 = vadd.f32 %v1356_v26, %v438_v21  ;;  %v1039_v7 = vadd.f32 (!%p1246_p13), %v1775_v50, %v1000_v4  ;;  %v1008_v21 = vld [vmem:[#allocation2 + $0x90] sm:$0xff] (!%p1246_p13)  ;;  %v1010_v26 = vld [vmem:[#allocation2 + $0xa0] sm:$0xff] (!%p1246_p13) }
 0x171   : > { %v1001_v8 = vld [vmem:[#allocation2 + $0x58] sm:$0xff] (!%p1246_p13)  ;;  %v1045_v19 = vadd.f32 (!%p1246_p13), %v1775_v50, %v1006_v16  ;;  %v1046_v23 = vadd.f32 (!%p1246_p13), %v1775_v50, %v1007_v20  ;;  %v1047_v24 = vadd.f32 (!%p1246_p13), %v1775_v50, %v1008_v21  ;;  %v1048_v25 = vadd.f32 (!%p1246_p13), %v1775_v50, %v1009_v22 }
 0x172   : > { %967 = vst [vmem:[#allocation2 + $0x68] sm:$0xff] %v935_v27  ;;  %983 = vst [vmem:[#allocation2 + $0xe8] sm:$0xff] %v951_v28  ;;  %v1309_v29 = vpop.f32.mrb[28].mxu0  ;;  %v1357_v30 = vpop.f32.mrb[28].mxu1  ;;  %v1040_v11 = vadd.f32 (!%p1246_p13), %v1775_v50, %v1001_v8  ;;  %v1011_v27 = vld [vmem:[#allocation2 + $0xa8] sm:$0xff] (!%p1246_p13)  ;;  %v1012_v28 = vld [vmem:[#allocation2 + $0xb0] sm:$0xff] (!%p1246_p13) }
 0x173   : > { %v1310_v32 = vpop.f32.mrb[29].mxu0  ;;  %v1358_v34 = vpop.f32.mrb[29].mxu1  ;;  %1071 = vst [vmem:[%s1718_s30 + $0x50] sm:$0xff] (!%p1246_p13), %v1039_v7  ;;  %1077 = vst [vmem:[%s1718_s30 + $0x80] sm:$0xff] (!%p1246_p13), %v1045_v19 }
 0x174   : > { %v1311_v35 = vadd.f32 %v1310_v32, %v1309_v29  ;;  %v1359_v36 = vadd.f32 %v1358_v34, %v1357_v30  ;;  %v1312_v37 = vpop.f32.mrb[30].mxu0  ;;  %v1360_v38 = vpop.f32.mrb[30].mxu1  ;;  %989 = sbr.rel (%p1246_p13) target bundleno = 390 (0x186), region = 78  ;;  %1072 = vst [vmem:[%s1718_s30 + $0x58] sm:$0xff] (!%p1246_p13), %v1040_v11  ;;  %v1049_v29 = vadd.f32 (!%p1246_p13), %v1775_v50, %v1010_v26  ;;  %v1050_v30 = vadd.f32 (!%p1246_p13), %v1775_v50, %v1011_v27  ;;  %v1013_v32 = vld [vmem:[#allocation2 + $0xb8] sm:$0xff] (!%p1246_p13)  ;;  %v1015_v34 = vld [vmem:[#allocation2 + $0xc8] sm:$0xff] (!%p1246_p13) }
 0x175   : > { %v1313_v40 = vpop.f32.mrb[31].mxu0  ;;  %v1361_v42 = vpop.f32.mrb[31].mxu1  ;;  %1078 = vst [vmem:[%s1718_s30 + $0x88] sm:$0xff] (!%p1246_p13), %v1046_v23  ;;  %1079 = vst [vmem:[%s1718_s30 + $0x90] sm:$0xff] (!%p1246_p13), %v1047_v24 }
 0x176   : > { %v936_v43 = vadd.f32 %v1311_v35, %v423_v31  ;;  %v952_v44 = vadd.f32 %v1359_v36, %v439_v33  ;;  %v1314_v45 = vadd.f32 %v1313_v40, %v1312_v37  ;;  %v1362_v46 = vadd.f32 %v1361_v42, %v1360_v38  ;;  %v1014_v33 = vld [vmem:[#allocation2 + $0xc0] sm:$0xff] (!%p1246_p13)  ;;  %1080 = vst [vmem:[%s1718_s30 + $0x98] sm:$0xff] (!%p1246_p13), %v1048_v25  ;;  %v1016_v38 = vld [vmem:[#allocation2 + $0xd0] sm:$0xff] (!%p1246_p13) }
 0x177   : > { %v1002_v9 = vld [vmem:[#allocation2 + $0x60] sm:$0xff] (!%p1246_p13)  ;;  %v1051_v31 = vadd.f32 (!%p1246_p13), %v1775_v50, %v1012_v28  ;;  %v1052_v35 = vadd.f32 (!%p1246_p13), %v1775_v50, %v1013_v32  ;;  %v1053_v36 = vadd.f32 (!%p1246_p13), %v1775_v50, %v1014_v33  ;;  %v1054_v37 = vadd.f32 (!%p1246_p13), %v1775_v50, %v1015_v34  ;;  %1081 = vst [vmem:[%s1718_s30 + $0xa0] sm:$0xff] (!%p1246_p13), %v1049_v29 }
 0x178   : > { %968 = vst [vmem:[#allocation2 + $0x70] sm:$0xff] %v936_v43  ;;  %984 = vst [vmem:[#allocation2 + $0xf0] sm:$0xff] %v952_v44  ;;  %v937_v47 = vadd.f32 %v1314_v45, %v424_v39  ;;  %v953_v48 = vadd.f32 %v1362_v46, %v440_v41  ;;  %v1041_v12 = vadd.f32 (!%p1246_p13), %v1775_v50, %v1002_v9  ;;  %v1017_v39 = vld [vmem:[#allocation2 + $0xd8] sm:$0xff] (!%p1246_p13)  ;;  %v1018_v40 = vld [vmem:[#allocation2 + $0xe0] sm:$0xff] (!%p1246_p13) }
 0x179   : > { %v1003_v10 = vld [vmem:[#allocation2 + $0x68] sm:$0xff] (!%p1246_p13)  ;;  %1082 = vst [vmem:[%s1718_s30 + $0xa8] sm:$0xff] (!%p1246_p13), %v1050_v30  ;;  %1083 = vst [vmem:[%s1718_s30 + $0xb0] sm:$0xff] (!%p1246_p13), %v1051_v31  ;;  %v1055_v41 = vadd.f32 (!%p1246_p13), %v1775_v50, %v1016_v38  ;;  %v1056_v42 = vadd.f32 (!%p1246_p13), %v1775_v50, %v1017_v39  ;;  %v1057_v43 = vadd.f32 (!%p1246_p13), %v1775_v50, %v1018_v40 }
 0x17a   : > { %969 = vst [vmem:[#allocation2 + $0x78] sm:$0xff] %v937_v47  ;;  %985 = vst [vmem:[#allocation2 + $0xf8] sm:$0xff] %v953_v48  ;;  %v1042_v13 = vadd.f32 (!%p1246_p13), %v1775_v50, %v1003_v10  ;;  %v1019_v44 = vld [vmem:[#allocation2 + $0xe8] sm:$0xff] (!%p1246_p13) }
 0x17b   : > { %1073 = vst [vmem:[%s1718_s30 + $0x60] sm:$0xff] %v1041_v12  ;;  %1084 = vst [vmem:[%s1718_s30 + $0xb8] sm:$0xff] %v1052_v35  ;;  %v1058_v47 = vadd.f32 %v1775_v50, %v1019_v44 }
 0x17c   : > { %1074 = vst [vmem:[%s1718_s30 + $0x68] sm:$0xff] %v1042_v13  ;;  %1085 = vst [vmem:[%s1718_s30 + $0xc0] sm:$0xff] %v1053_v36 }
 0x17d   : > { %1086 = vst [vmem:[%s1718_s30 + $0xc8] sm:$0xff] %v1054_v37  ;;  %1087 = vst [vmem:[%s1718_s30 + $0xd0] sm:$0xff] %v1055_v41 }
 0x17e   : > { %1088 = vst [vmem:[%s1718_s30 + $0xd8] sm:$0xff] %v1056_v42  ;;  %1089 = vst [vmem:[%s1718_s30 + $0xe0] sm:$0xff] %v1057_v43 }
 0x17f   : > { %v1004_v14 = vld [vmem:[#allocation2 + $0x70] sm:$0xff]  ;;  %1090 = vst [vmem:[%s1718_s30 + $0xe8] sm:$0xff] %v1058_v47 }
 0x180   : > { %v1043_v17 = vadd.f32 %v1775_v50, %v1004_v14  ;;  %v1020_v45 = vld [vmem:[#allocation2 + $0xf0] sm:$0xff] }
 0x181   : > { %v1005_v15 = vld [vmem:[#allocation2 + $0x78] sm:$0xff]  ;;  %v1059_v48 = vadd.f32 %v1775_v50, %v1020_v45 }
 0x182   : > { %v1044_v18 = vadd.f32 %v1775_v50, %v1005_v15  ;;  %1075 = vst [vmem:[%s1718_s30 + $0x70] sm:$0xff] %v1043_v17  ;;  %v1021_v46 = vld [vmem:[#allocation2 + $0xf8] sm:$0xff] }
 0x183   : > { %v1060_v49 = vadd.f32 %v1775_v50, %v1021_v46  ;;  %1091 = vst [vmem:[%s1718_s30 + $0xf0] sm:$0xff] %v1059_v48 }
 0x184   : > { %1076 = vst [vmem:[%s1718_s30 + $0x78] sm:$0xff] %v1044_v18 }
 0x185   : > { %1092 = vst [vmem:[%s1718_s30 + $0xf8] sm:$0xff] %v1060_v49 }
 0x186 PF: > { %s13_s18 = sadd.s32 1, %s1554_s18   ;;  %s1866_s12 = smov %s1534_s13 }
 0x187   : > { %p10_p0 = scmp.ge.s32.totalorder %s13_s18, 6   ;;  %s1867_s13 = smov %s1628_s25 }
 0x188   : > { %s1868_s14 = smov %s1546_s16  ;;  %s1869_s15 = smov %s1550_s17 }
 0x189   : > { %s1870_s16 = smov %s1873_s19  ;;  %s1871_s17 = smov %s1877_s20 }
 0x18a   :  { %12 = sbr.rel (!%p10_p0) target bundleno = 4 (0x4), region = 116 }

</bundles_post_ra>
